<compile_context>
chip_gen: v7x
topology: tpu7x:2x2x1
jax: 0.10.0
libtpu: 0.0.40
codegen_flags: <defaults>
</compile_context>

<pallas_src>
import functools

import jax
import jax.numpy as jnp
from jax import lax
from jax.experimental import pallas as pl
from jax.experimental.pallas import tpu as pltpu


# A @ B^T on 2-D operands: contract the last axis of both, no materialized transpose.
_CONTRACT_LAST = (((1,), (1,)), ((), ()))


# ----------------------------- in-kernel helpers ---------------------------------


def _layernorm(x, w, b, eps):
    mu = jnp.mean(x, axis=-1, keepdims=True)
    var = jnp.mean((x - mu) ** 2, axis=-1, keepdims=True)
    return (x - mu) * lax.rsqrt(var + eps) * w + b


# ----------------------------- fused stage kernel --------------------------------


def fused_stage_kernel(
    x_ref,                                   # [Bc*T, E]  (batch collapsed into rows)
    wqkv_ref, bqkv_ref,                      # [L, E, 3E], [L, 1, 3E]
    wo_ref, bo_ref,                          # [L, E, E],  [L, 1, E]
    ln1w_ref, ln1b_ref,                      # [L, 1, E]
    w1_ref, b1_ref,                          # [L, E, Fh], [L, 1, Fh]
    w2_ref, b2_ref,                          # [L, Fh, E], [L, 1, E]
    ln2w_ref, ln2b_ref,                      # [L, 1, E]
    gwqkv_ref, gwo_ref,                      # [E, 3E], [E, E]   (grouping, bias=False)
    glnw_ref, glnb_ref,                      # [1, E]
    out_ref,                                 # [Bc, G, E]
    assn_ref,                                # [Bc, G, S]
    ctx_vmem,                                # VMEM [Bc*T, E] (per-head context assembly)
    *, num_layers, num_heads, num_groups, tokens, eps,
):
    M, E = x_ref.shape
    T = tokens
    Bc = M // T
    hd = E // num_heads

    # ---------- transformer encoder layers (fori_loop over stacked weights) ----------
    def layer_body(l, h):
        # fused QKV projection over all Bc*T rows (attention scale pre-folded into
        # the Q columns at prepack time) -- one big MXU op.
        qkv = (jnp.dot(h, wqkv_ref[l], preferred_element_type=jnp.float32)
               + bqkv_ref[l])                                            # [M, 3E]

        # self-attention: per (batch, head) 2-D matmuls on static slices; head
        # outputs are assembled in a VMEM tile so W_o runs as ONE [M,E]x[E,E] matmul.
        for b in range(Bc):
            r0 = b * T
            for hh in range(num_heads):
                lo = hh * hd
                q = qkv[r0:r0 + T, lo:lo + hd]                           # [T, hd]
                k = qkv[r0:r0 + T, E + lo:E + lo + hd]
                v = qkv[r0:r0 + T, 2 * E + lo:2 * E + lo + hd]
                s = lax.dot_general(q, k, _CONTRACT_LAST,
                                    preferred_element_type=jnp.float32)  # [T, T]
                s = s - jnp.max(s, axis=-1, keepdims=True)
                p = jnp.exp(s)
                p = p / jnp.sum(p, axis=-1, keepdims=True)               # exact divide
                ctx_vmem[r0:r0 + T, lo:lo + hd] = jnp.dot(
                    p, v, preferred_element_type=jnp.float32)

        attn = (jnp.dot(ctx_vmem[...], wo_ref[l],
                        preferred_element_type=jnp.float32) + bo_ref[l])

        # post-norm residual block 1 (dropout = identity in eval)
        h1 = _layernorm(h + attn, ln1w_ref[l], ln1b_ref[l], eps)

        # feed-forward (ReLU) with M = Bc*T rows
        f = jnp.dot(h1, w1_ref[l], preferred_element_type=jnp.float32) + b1_ref[l]
        f = jnp.maximum(f, 0.0)
        f = jnp.dot(f, w2_ref[l], preferred_element_type=jnp.float32) + b2_ref[l]

        # post-norm residual block 2
        return _layernorm(h1 + f, ln2w_ref[l], ln2b_ref[l], eps)

    h = lax.fori_loop(0, num_layers, layer_body, x_ref[...])

    # ---------- grouping layer ----------
    G = num_groups
    # fused grouping Wq/Wk/Wv applied to the full lane-dense [M, E] activation.
    y = jnp.dot(h, gwqkv_ref[...], preferred_element_type=jnp.float32)   # [M, 3E]
    gwo = gwo_ref[...]
    glnw = glnw_ref[...]
    glnb = glnb_ref[...]

    for b in range(Bc):
        r0 = b * T
        g_toks = h[r0:r0 + G, :]                                         # [G, E]
        gq = y[r0:r0 + G, :E]                                            # [G, E]
        gk = y[r0 + G:r0 + T, E:2 * E]                                   # [S, E]
        gv = y[r0 + G:r0 + T, 2 * E:]                                    # [S, E]

        attn_gs = lax.dot_general(gq, gk, _CONTRACT_LAST,
                                  preferred_element_type=jnp.float32)    # [G, S]

        # hard_softmax over the group axis (dim=-2): one-hot of the first argmax
        # group per sequence token (straight-through terms cancel in forward).
        m = jnp.max(attn_gs, axis=0, keepdims=True)                      # [1, S]
        giota = lax.broadcasted_iota(jnp.int32, attn_gs.shape, 0)        # [G, S]
        cand = jnp.where(attn_gs == m, giota, G)
        idx = jnp.min(cand, axis=0, keepdims=True)                       # [1, S]
        assn = (giota == idx).astype(jnp.float32)                        # [G, S]

        emb = jnp.dot(assn, gv, preferred_element_type=jnp.float32)      # [G, E]
        o = jnp.dot(emb, gwo, preferred_element_type=jnp.float32)
        out_ref[b] = _layernorm(o + g_toks, glnw, glnb, eps)
        assn_ref[b] = assn


def make_fused_call(B, T, S, E, Fh, L, num_groups, num_heads, eps,
                    num_batch_blocks=1):
    # num_batch_blocks=1: whole batch in one grid step (best on single-TC v5e/v6e).
    # num_batch_blocks=2: two "parallel" blocks so both v7x TensorCores are busy
    # (requires (B//2)*T to be sublane-aligned at deployment shapes).
    assert B % num_batch_blocks == 0
    Bc = B // num_batch_blocks
    M = Bc * T

    kernel = functools.partial(
        fused_stage_kernel,
        num_layers=L, num_heads=num_heads, num_groups=num_groups, tokens=T, eps=eps)

    def full(shape):
        return pl.BlockSpec(shape, lambda nb: (0,) * len(shape))

    in_specs = [
        pl.BlockSpec((M, E), lambda nb: (nb, 0)),                # flattened tokens
        full((L, E, 3 * E)), full((L, 1, 3 * E)),                # fused Wqkv, bqkv
        full((L, E, E)), full((L, 1, E)),                        # Wo, bo
        full((L, 1, E)), full((L, 1, E)),                        # ln1 w, b
        full((L, E, Fh)), full((L, 1, Fh)),                      # W1, b1
        full((L, Fh, E)), full((L, 1, E)),                       # W2, b2
        full((L, 1, E)), full((L, 1, E)),                        # ln2 w, b
        full((E, 3 * E)), full((E, E)),                          # grouping Wqkv, Wo
        full((1, E)), full((1, E)),                              # grouping LN w, b
    ]

    # advisory cost estimate so XLA schedules neighbouring ops sensibly
    Mtot = B * T
    flops = L * (2 * Mtot * E * 3 * E            # fused QKV
                 + 4 * B * T * T * E             # scores + context
                 + 2 * Mtot * E * E              # Wo
                 + 4 * Mtot * E * Fh)            # FFN
    flops += 2 * Mtot * E * 3 * E + 2 * B * num_groups * (S * E + E * E)
    transcendentals = L * B * num_heads * T * T
    bytes_accessed = 4 * (B * T * E
                          + L * (3 * E * E + 3 * E + E * E + E + 2 * E
                                 + E * Fh + Fh + Fh * E + E + 2 * E)
                          + 3 * E * E + E * E + 2 * E
                          + B * num_groups * (E + S))

    return pl.pallas_call(
        kernel,
        out_shape=(
            jax.ShapeDtypeStruct((B, num_groups, E), jnp.float32),
            jax.ShapeDtypeStruct((B, num_groups, S), jnp.float32),
        ),
        grid=(num_batch_blocks,),
        in_specs=in_specs,
        out_specs=(
            pl.BlockSpec((Bc, num_groups, E), lambda nb: (nb, 0, 0)),
            pl.BlockSpec((Bc, num_groups, S), lambda nb: (nb, 0, 0)),
        ),
        scratch_shapes=[pltpu.VMEM((M, E), jnp.float32)],
        cost_estimate=pl.CostEstimate(flops=flops,
                                      transcendentals=transcendentals,
                                      bytes_accessed=bytes_accessed),
        compiler_params=pltpu.CompilerParams(dimension_semantics=("parallel",)),
        # TODO(synk): at deployment scale set vmem_limit_bytes from the actual buffer
        # sum (or stream weights over a grid axis in bf16 for v7x's 64 MiB VMEM).
    )


# ----------------------------- parameter init + one-time repack -------------------


def init_params(key, num_groups, num_layers, E, mlp_scale):
    Fh = E * mlp_scale
    keys = iter(jax.random.split(key, 8 + num_layers * 8))
    p = {}
    p["groups"] = jax.random.normal(next(keys), (num_groups, E), jnp.float32)

    def w(shape):
        return 0.05 * jax.random.normal(next(keys), shape, jnp.float32)

    layers = []
    for _ in range(num_layers):
        layers.append(dict(
            wq=w((E, E)), wk=w((E, E)), wv=w((E, E)),
            bq=jnp.zeros((1, E)), bk=jnp.zeros((1, E)), bv=jnp.zeros((1, E)),
            wo=w((E, E)), bo=jnp.zeros((1, E)),
            ln1w=jnp.ones((1, E)), ln1b=jnp.zeros((1, E)),
            w1=w((E, Fh)), b1=jnp.zeros((1, Fh)),
            w2=w((Fh, E)), b2=jnp.zeros((1, E)),
            ln2w=jnp.ones((1, E)), ln2b=jnp.zeros((1, E)),
        ))
    p["layers"] = layers
    p["grp"] = dict(
        wq=w((E, E)), wk=w((E, E)), wv=w((E, E)), wo=w((E, E)),   # bias=False
        lnw=jnp.ones((1, E)), lnb=jnp.zeros((1, E)),
    )
    return p


def prepack_params(params, num_heads):
    """One-time weight repack (parameter-load time, NOT per forward call):
    fold 1/sqrt(head_dim) into W_q/b_q, fuse Q/K/V into one [E, 3E] projection,
    stack per-layer tensors on a leading L axis, fuse grouping Wq/Wk/Wv."""
    layers = params["layers"]
    E = params["groups"].shape[1]
    hd = E // num_heads
    scale = 1.0 / (hd ** 0.5)

    def stack(name):
        return jnp.stack([lp[name] for lp in layers])

    gp = params["grp"]
    # TODO(synk): for deployment, also cast matmul weights to bf16 here (keeping
    # LayerNorm / softmax math in f32); kept f32 to preserve exact tie-breaking of
    # the hard-softmax and tight parity with the reference.
    return dict(
        groups=params["groups"],
        wqkv=jnp.stack([jnp.concatenate([lp["wq"] * scale, lp["wk"], lp["wv"]], axis=1)
                        for lp in layers]),
        bqkv=jnp.stack([jnp.concatenate([lp["bq"] * scale, lp["bk"], lp["bv"]], axis=1)
                        for lp in layers]),
        wo=stack("wo"), bo=stack("bo"),
        ln1w=stack("ln1w"), ln1b=stack("ln1b"),
        w1=stack("w1"), b1=stack("b1"),
        w2=stack("w2"), b2=stack("b2"),
        ln2w=stack("ln2w"), ln2b=stack("ln2b"),
        gwqkv=jnp.concatenate([gp["wq"], gp["wk"], gp["wv"]], axis=1),
        gwo=gp["wo"], glnw=gp["lnw"], glnb=gp["lnb"],
    )


# ----------------------------- forward --------------------------------------------


def grouping_stage_forward(packed, x, *, num_groups, num_heads, eps=1e-6,
                           num_batch_blocks=1):
    """x: [B, S, E] sequence tokens.  Returns (group_embs [B,G,E], group_assn [B,G,S])."""
    B, S, E = x.shape
    T = S + num_groups
    L, _, Fh = packed["w1"].shape

    # glue: prepend learned group tokens and flatten batch into the matmul M dim
    grp_tok = jnp.broadcast_to(packed["groups"][None], (B, num_groups, E))
    h = jnp.concatenate([grp_tok, x], axis=1).astype(jnp.float32)      # [B, T, E]
    h = h.reshape(B * T, E)                                            # [B*T, E]

    call = make_fused_call(B, T, S, E, Fh, L, num_groups, num_heads, eps,
                           num_batch_blocks=num_batch_blocks)
    return call(
        h,
        packed["wqkv"], packed["bqkv"],
        packed["wo"], packed["bo"],
        packed["ln1w"], packed["ln1b"],
        packed["w1"], packed["b1"],
        packed["w2"], packed["b2"],
        packed["ln2w"], packed["ln2b"],
        packed["gwqkv"], packed["gwo"],
        packed["glnw"], packed["glnb"],
    )


# ----------------------------- pure-JAX reference (for sanity check) --------------


def reference_forward(params, x, *, num_groups, num_heads, eps=1e-6):
    P = jax.lax.Precision.HIGHEST
    B, S, E = x.shape
    hd = E // num_heads
    grp = jnp.broadcast_to(params["groups"][None], (B, num_groups, E))
    h = jnp.concatenate([grp, x], axis=1).astype(jnp.float32)

    def ln(z, w, b):
        mu = jnp.mean(z, -1, keepdims=True)
        var = jnp.mean((z - mu) ** 2, -1, keepdims=True)
        return (z - mu) * jax.lax.rsqrt(var + eps) * w[0] + b[0]

    for lp in params["layers"]:
        q = jnp.einsum("bte,ef->btf", h, lp["wq"], precision=P) + lp["bq"][0]
        k = jnp.einsum("bte,ef->btf", h, lp["wk"], precision=P) + lp["bk"][0]
        v = jnp.einsum("bte,ef->btf", h, lp["wv"], precision=P) + lp["bv"][0]
        T = h.shape[1]
        qh = q.reshape(B, T, num_heads, hd)
        kh = k.reshape(B, T, num_heads, hd)
        vh = v.reshape(B, T, num_heads, hd)
        s = jnp.einsum("bqhd,bkhd->bhqk", qh, kh, precision=P) / (hd ** 0.5)
        s = s - jnp.max(s, -1, keepdims=True)
        p = jnp.exp(s)
        p = p / jnp.sum(p, -1, keepdims=True)
        a = jnp.einsum("bhqk,bkhd->bqhd", p, vh, precision=P).reshape(B, T, E)
        a = jnp.einsum("bte,ef->btf", a, lp["wo"], precision=P) + lp["bo"][0]
        h1 = ln(h + a, lp["ln1w"], lp["ln1b"])
        f = jnp.maximum(jnp.einsum("bte,ef->btf", h1, lp["w1"], precision=P) + lp["b1"][0], 0.0)
        f = jnp.einsum("btf,fe->bte", f, lp["w2"], precision=P) + lp["b2"][0]
        h = ln(h1 + f, lp["ln2w"], lp["ln2b"])

    gp = params["grp"]
    g_toks, s_toks = h[:, :num_groups], h[:, num_groups:]
    q = jnp.einsum("bge,ef->bgf", g_toks, gp["wq"], precision=P)
    k = jnp.einsum("bse,ef->bsf", s_toks, gp["wk"], precision=P)
    v = jnp.einsum("bse,ef->bsf", s_toks, gp["wv"], precision=P)
    attn = jnp.einsum("bgd,bsd->bgs", q, k, precision=P)
    idx = jnp.argmax(attn, axis=1)                                   # [B, S]
    assn = jax.nn.one_hot(idx, num_groups, axis=1, dtype=jnp.float32)
    emb = jnp.einsum("bgs,bsd->bgd", assn, v, precision=P)
    o = jnp.einsum("bgd,de->bge", emb, gp["wo"], precision=P)
    return ln(o + g_toks, gp["lnw"], gp["lnb"]), assn


# ----------------------------- main ------------------------------------------------


if __name__ == "__main__":
    B, S, E = 2, 8, 32           # batch, seq tokens, embed_dim
    NUM_GROUPS = 4
    NUM_LAYERS = 2
    NUM_HEADS = 4
    MLP_SCALE = 4

    key = jax.random.PRNGKey(0)
    kp, kx = jax.random.split(key)
    params = init_params(kp, NUM_GROUPS, NUM_LAYERS, E, MLP_SCALE)
    x = jax.random.normal(kx, (B, S, E), jnp.float32)

    # one-time weight repack at parameter-load time (NOT per forward call)
    packed = prepack_params(params, NUM_HEADS)

    out, assn = grouping_stage_forward(
        packed, x, num_groups=NUM_GROUPS, num_heads=NUM_HEADS
    )
    out = jax.block_until_ready(out)
    assn = jax.block_until_ready(assn)

    ref_out, ref_assn = reference_forward(
        params, x, num_groups=NUM_GROUPS, num_heads=NUM_HEADS
    )

    assert out.shape == (B, NUM_GROUPS, E)
    assert assn.shape == (B, NUM_GROUPS, S)
    assert jnp.allclose(assn, ref_assn)
    # tolerance covers MXU default precision vs. Precision.HIGHEST in the reference
    assert jnp.allclose(out, ref_out, atol=2e-3, rtol=2e-3)
    print("KERNEL_OK")
</pallas_src>

<mosaic_0001>
module attributes {stable_mosaic.version = 11 : i64} {
  func.func @fused_stage_kernel(%arg0: i32, %arg1: memref<24x32xf32, #tpu.memory_space<vmem>>, %arg2: memref<2x32x96xf32, #tpu.memory_space<vmem>>, %arg3: memref<2x1x96xf32, #tpu.memory_space<vmem>>, %arg4: memref<2x32x32xf32, #tpu.memory_space<vmem>>, %arg5: memref<2x1x32xf32, #tpu.memory_space<vmem>>, %arg6: memref<2x1x32xf32, #tpu.memory_space<vmem>>, %arg7: memref<2x1x32xf32, #tpu.memory_space<vmem>>, %arg8: memref<2x32x128xf32, #tpu.memory_space<vmem>>, %arg9: memref<2x1x128xf32, #tpu.memory_space<vmem>>, %arg10: memref<2x128x32xf32, #tpu.memory_space<vmem>>, %arg11: memref<2x1x32xf32, #tpu.memory_space<vmem>>, %arg12: memref<2x1x32xf32, #tpu.memory_space<vmem>>, %arg13: memref<2x1x32xf32, #tpu.memory_space<vmem>>, %arg14: memref<32x96xf32, #tpu.memory_space<vmem>>, %arg15: memref<32x32xf32, #tpu.memory_space<vmem>>, %arg16: memref<1x32xf32, #tpu.memory_space<vmem>>, %arg17: memref<1x32xf32, #tpu.memory_space<vmem>>, %arg18: memref<2x4x32xf32, #tpu.memory_space<vmem>>, %arg19: memref<2x4x8xf32, #tpu.memory_space<vmem>>, %arg20: memref<24x32xf32, #tpu.memory_space<vmem>>) attributes {dimension_semantics = [#tpu.dimension_semantics<parallel>], iteration_bounds = array<i64: 1>, scalar_prefetch = 0 : i64, scratch_operands = 1 : i64, tpu.core_type = #tpu.core_type<tc>, window_params = [{transform_indices = @transform_0, window_bounds = array<i64: 24, 32>}, {pipeline_mode = #tpu.pipeline_mode<synchronous>, transform_indices = @transform_1, window_bounds = array<i64: 2, 32, 96>}, {pipeline_mode = #tpu.pipeline_mode<synchronous>, transform_indices = @transform_2, window_bounds = array<i64: 2, 1, 96>}, {pipeline_mode = #tpu.pipeline_mode<synchronous>, transform_indices = @transform_3, window_bounds = array<i64: 2, 32, 32>}, {pipeline_mode = #tpu.pipeline_mode<synchronous>, transform_indices = @transform_4, window_bounds = array<i64: 2, 1, 32>}, {pipeline_mode = #tpu.pipeline_mode<synchronous>, transform_indices = @transform_5, window_bounds = array<i64: 2, 1, 32>}, {pipeline_mode = #tpu.pipeline_mode<synchronous>, transform_indices = @transform_6, window_bounds = array<i64: 2, 1, 32>}, {pipeline_mode = #tpu.pipeline_mode<synchronous>, transform_indices = @transform_7, window_bounds = array<i64: 2, 32, 128>}, {pipeline_mode = #tpu.pipeline_mode<synchronous>, transform_indices = @transform_8, window_bounds = array<i64: 2, 1, 128>}, {pipeline_mode = #tpu.pipeline_mode<synchronous>, transform_indices = @transform_9, window_bounds = array<i64: 2, 128, 32>}, {pipeline_mode = #tpu.pipeline_mode<synchronous>, transform_indices = @transform_10, window_bounds = array<i64: 2, 1, 32>}, {pipeline_mode = #tpu.pipeline_mode<synchronous>, transform_indices = @transform_11, window_bounds = array<i64: 2, 1, 32>}, {pipeline_mode = #tpu.pipeline_mode<synchronous>, transform_indices = @transform_12, window_bounds = array<i64: 2, 1, 32>}, {pipeline_mode = #tpu.pipeline_mode<synchronous>, transform_indices = @transform_13, window_bounds = array<i64: 32, 96>}, {pipeline_mode = #tpu.pipeline_mode<synchronous>, transform_indices = @transform_14, window_bounds = array<i64: 32, 32>}, {pipeline_mode = #tpu.pipeline_mode<synchronous>, transform_indices = @transform_15, window_bounds = array<i64: 1, 32>}, {pipeline_mode = #tpu.pipeline_mode<synchronous>, transform_indices = @transform_16, window_bounds = array<i64: 1, 32>}, {transform_indices = @transform_17, window_bounds = array<i64: 2, 4, 32>}, {transform_indices = @transform_18, window_bounds = array<i64: 2, 4, 8>}]} {
    %c0 = arith.constant 0 : index
    %c0_0 = arith.constant 0 : index
    %0 = vector.load %arg1[%c0, %c0_0] : memref<24x32xf32, #tpu.memory_space<vmem>>, vector<24x32xf32>
    %c0_i32 = arith.constant 0 : i32
    %c2_i32 = arith.constant 2 : i32
    %1 = arith.addi %c0_i32, %c2_i32 : i32
    %c1_i32 = arith.constant 1 : i32
    %2 = scf.for %arg21 = %c0_i32 to %1 step %c1_i32 iter_args(%arg22 = %0) -> (vector<24x32xf32>)  : i32 {
      %106 = arith.index_cast %arg21 : i32 to index
      %c0_42 = arith.constant 0 : index
      %c0_43 = arith.constant 0 : index
      %107 = vector.load %arg2[%106, %c0_42, %c0_43] : memref<2x32x96xf32, #tpu.memory_space<vmem>>, vector<1x32x96xf32>
      %108 = vector.shape_cast %107 : vector<1x32x96xf32> to vector<32x96xf32>
      %cst_44 = arith.constant dense<0.000000e+00> : vector<24x96xf32>
      %109 = tpu.matmul %arg22, %108, %cst_44 {dimension_numbers = #tpu.dot_dimension_numbers<[1], [0], [0], [1], [0, 0, 1, 1], [], []>} : vector<24x32xf32>, vector<32x96xf32>, vector<24x96xf32> -> vector<24x96xf32>
      %110 = arith.index_cast %arg21 : i32 to index
      %c0_45 = arith.constant 0 : index
      %c0_46 = arith.constant 0 : index
      %111 = vector.load %arg3[%110, %c0_45, %c0_46] : memref<2x1x96xf32, #tpu.memory_space<vmem>>, vector<1x1x96xf32>
      %112 = vector.shape_cast %111 : vector<1x1x96xf32> to vector<1x96xf32>
      %113 = vector.broadcast %112 : vector<1x96xf32> to vector<24x96xf32>
      %114 = arith.addf %109, %113 : vector<24x96xf32>
      %115 = vector.extract_strided_slice %114 {offsets = [0, 0], sizes = [12, 8], strides = [1, 1]} : vector<24x96xf32> to vector<12x8xf32>
      %116 = vector.extract_strided_slice %114 {offsets = [0, 32], sizes = [12, 8], strides = [1, 1]} : vector<24x96xf32> to vector<12x8xf32>
      %117 = vector.extract_strided_slice %114 {offsets = [0, 64], sizes = [12, 8], strides = [1, 1]} : vector<24x96xf32> to vector<12x8xf32>
      %cst_47 = arith.constant dense<0.000000e+00> : vector<12x12xf32>
      %118 = tpu.matmul %115, %116, %cst_47 {dimension_numbers = #tpu.dot_dimension_numbers<[1], [1], [0], [0], [0, 0, 1, 0], [], []>} : vector<12x8xf32>, vector<12x8xf32>, vector<12x12xf32> -> vector<12x12xf32>
      %cst_48 = arith.constant dense<0xFF800000> : vector<12xf32>
      %119 = vector.multi_reduction <maximumf>, %118, %cst_48 [1] : vector<12x12xf32> to vector<12xf32>
      %120 = vector.shape_cast %119 : vector<12xf32> to vector<12x1xf32>
      %121 = vector.broadcast %120 : vector<12x1xf32> to vector<12x12xf32>
      %122 = arith.subf %118, %121 : vector<12x12xf32>
      %123 = math.exp %122 : vector<12x12xf32>
      %cst_49 = arith.constant dense<0.000000e+00> : vector<12xf32>
      %124 = vector.multi_reduction <add>, %123, %cst_49 [1] : vector<12x12xf32> to vector<12xf32>
      %125 = vector.shape_cast %124 : vector<12xf32> to vector<12x1xf32>
      %126 = vector.broadcast %125 : vector<12x1xf32> to vector<12x12xf32>
      %127 = arith.divf %123, %126 : vector<12x12xf32>
      %cst_50 = arith.constant dense<0.000000e+00> : vector<12x8xf32>
      %128 = tpu.matmul %127, %117, %cst_50 {dimension_numbers = #tpu.dot_dimension_numbers<[1], [0], [0], [1], [0, 0, 1, 1], [], []>} : vector<12x12xf32>, vector<12x8xf32>, vector<12x8xf32> -> vector<12x8xf32>
      %c0_51 = arith.constant 0 : index
      %c0_52 = arith.constant 0 : index
      %129 = vector.load %arg20[%c0_51, %c0_52] : memref<24x32xf32, #tpu.memory_space<vmem>>, vector<12x8xf32>
      tpu.vector_store %arg20[%c0_51, %c0_52], %128 {strides = array<i32>} : memref<24x32xf32, #tpu.memory_space<vmem>>, vector<12x8xf32>,
      %130 = vector.extract_strided_slice %114 {offsets = [0, 8], sizes = [12, 8], strides = [1, 1]} : vector<24x96xf32> to vector<12x8xf32>
      %131 = vector.extract_strided_slice %114 {offsets = [0, 40], sizes = [12, 8], strides = [1, 1]} : vector<24x96xf32> to vector<12x8xf32>
      %132 = vector.extract_strided_slice %114 {offsets = [0, 72], sizes = [12, 8], strides = [1, 1]} : vector<24x96xf32> to vector<12x8xf32>
      %cst_53 = arith.constant dense<0.000000e+00> : vector<12x12xf32>
      %133 = tpu.matmul %130, %131, %cst_53 {dimension_numbers = #tpu.dot_dimension_numbers<[1], [1], [0], [0], [0, 0, 1, 0], [], []>} : vector<12x8xf32>, vector<12x8xf32>, vector<12x12xf32> -> vector<12x12xf32>
      %cst_54 = arith.constant dense<0xFF800000> : vector<12xf32>
      %134 = vector.multi_reduction <maximumf>, %133, %cst_54 [1] : vector<12x12xf32> to vector<12xf32>
      %135 = vector.shape_cast %134 : vector<12xf32> to vector<12x1xf32>
      %136 = vector.broadcast %135 : vector<12x1xf32> to vector<12x12xf32>
      %137 = arith.subf %133, %136 : vector<12x12xf32>
      %138 = math.exp %137 : vector<12x12xf32>
      %cst_55 = arith.constant dense<0.000000e+00> : vector<12xf32>
      %139 = vector.multi_reduction <add>, %138, %cst_55 [1] : vector<12x12xf32> to vector<12xf32>
      %140 = vector.shape_cast %139 : vector<12xf32> to vector<12x1xf32>
      %141 = vector.broadcast %140 : vector<12x1xf32> to vector<12x12xf32>
      %142 = arith.divf %138, %141 : vector<12x12xf32>
      %cst_56 = arith.constant dense<0.000000e+00> : vector<12x8xf32>
      %143 = tpu.matmul %142, %132, %cst_56 {dimension_numbers = #tpu.dot_dimension_numbers<[1], [0], [0], [1], [0, 0, 1, 1], [], []>} : vector<12x12xf32>, vector<12x8xf32>, vector<12x8xf32> -> vector<12x8xf32>
      %c0_57 = arith.constant 0 : index
      %c8 = arith.constant 8 : index
      %144 = vector.load %arg20[%c0_57, %c8] : memref<24x32xf32, #tpu.memory_space<vmem>>, vector<12x8xf32>
      tpu.vector_store %arg20[%c0_57, %c8], %143 {strides = array<i32>} : memref<24x32xf32, #tpu.memory_space<vmem>>, vector<12x8xf32>,
      %145 = vector.extract_strided_slice %114 {offsets = [0, 16], sizes = [12, 8], strides = [1, 1]} : vector<24x96xf32> to vector<12x8xf32>
      %146 = vector.extract_strided_slice %114 {offsets = [0, 48], sizes = [12, 8], strides = [1, 1]} : vector<24x96xf32> to vector<12x8xf32>
      %147 = vector.extract_strided_slice %114 {offsets = [0, 80], sizes = [12, 8], strides = [1, 1]} : vector<24x96xf32> to vector<12x8xf32>
      %cst_58 = arith.constant dense<0.000000e+00> : vector<12x12xf32>
      %148 = tpu.matmul %145, %146, %cst_58 {dimension_numbers = #tpu.dot_dimension_numbers<[1], [1], [0], [0], [0, 0, 1, 0], [], []>} : vector<12x8xf32>, vector<12x8xf32>, vector<12x12xf32> -> vector<12x12xf32>
      %cst_59 = arith.constant dense<0xFF800000> : vector<12xf32>
      %149 = vector.multi_reduction <maximumf>, %148, %cst_59 [1] : vector<12x12xf32> to vector<12xf32>
      %150 = vector.shape_cast %149 : vector<12xf32> to vector<12x1xf32>
      %151 = vector.broadcast %150 : vector<12x1xf32> to vector<12x12xf32>
      %152 = arith.subf %148, %151 : vector<12x12xf32>
      %153 = math.exp %152 : vector<12x12xf32>
      %cst_60 = arith.constant dense<0.000000e+00> : vector<12xf32>
      %154 = vector.multi_reduction <add>, %153, %cst_60 [1] : vector<12x12xf32> to vector<12xf32>
      %155 = vector.shape_cast %154 : vector<12xf32> to vector<12x1xf32>
      %156 = vector.broadcast %155 : vector<12x1xf32> to vector<12x12xf32>
      %157 = arith.divf %153, %156 : vector<12x12xf32>
      %cst_61 = arith.constant dense<0.000000e+00> : vector<12x8xf32>
      %158 = tpu.matmul %157, %147, %cst_61 {dimension_numbers = #tpu.dot_dimension_numbers<[1], [0], [0], [1], [0, 0, 1, 1], [], []>} : vector<12x12xf32>, vector<12x8xf32>, vector<12x8xf32> -> vector<12x8xf32>
      %c0_62 = arith.constant 0 : index
      %c16 = arith.constant 16 : index
      %159 = vector.load %arg20[%c0_62, %c16] : memref<24x32xf32, #tpu.memory_space<vmem>>, vector<12x8xf32>
      tpu.vector_store %arg20[%c0_62, %c16], %158 {strides = array<i32>} : memref<24x32xf32, #tpu.memory_space<vmem>>, vector<12x8xf32>,
      %160 = vector.extract_strided_slice %114 {offsets = [0, 24], sizes = [12, 8], strides = [1, 1]} : vector<24x96xf32> to vector<12x8xf32>
      %161 = vector.extract_strided_slice %114 {offsets = [0, 56], sizes = [12, 8], strides = [1, 1]} : vector<24x96xf32> to vector<12x8xf32>
      %162 = vector.extract_strided_slice %114 {offsets = [0, 88], sizes = [12, 8], strides = [1, 1]} : vector<24x96xf32> to vector<12x8xf32>
      %cst_63 = arith.constant dense<0.000000e+00> : vector<12x12xf32>
      %163 = tpu.matmul %160, %161, %cst_63 {dimension_numbers = #tpu.dot_dimension_numbers<[1], [1], [0], [0], [0, 0, 1, 0], [], []>} : vector<12x8xf32>, vector<12x8xf32>, vector<12x12xf32> -> vector<12x12xf32>
      %cst_64 = arith.constant dense<0xFF800000> : vector<12xf32>
      %164 = vector.multi_reduction <maximumf>, %163, %cst_64 [1] : vector<12x12xf32> to vector<12xf32>
      %165 = vector.shape_cast %164 : vector<12xf32> to vector<12x1xf32>
      %166 = vector.broadcast %165 : vector<12x1xf32> to vector<12x12xf32>
      %167 = arith.subf %163, %166 : vector<12x12xf32>
      %168 = math.exp %167 : vector<12x12xf32>
      %cst_65 = arith.constant dense<0.000000e+00> : vector<12xf32>
      %169 = vector.multi_reduction <add>, %168, %cst_65 [1] : vector<12x12xf32> to vector<12xf32>
      %170 = vector.shape_cast %169 : vector<12xf32> to vector<12x1xf32>
      %171 = vector.broadcast %170 : vector<12x1xf32> to vector<12x12xf32>
      %172 = arith.divf %168, %171 : vector<12x12xf32>
      %cst_66 = arith.constant dense<0.000000e+00> : vector<12x8xf32>
      %173 = tpu.matmul %172, %162, %cst_66 {dimension_numbers = #tpu.dot_dimension_numbers<[1], [0], [0], [1], [0, 0, 1, 1], [], []>} : vector<12x12xf32>, vector<12x8xf32>, vector<12x8xf32> -> vector<12x8xf32>
      %c0_67 = arith.constant 0 : index
      %c24 = arith.constant 24 : index
      %174 = vector.load %arg20[%c0_67, %c24] : memref<24x32xf32, #tpu.memory_space<vmem>>, vector<12x8xf32>
      tpu.vector_store %arg20[%c0_67, %c24], %173 {strides = array<i32>} : memref<24x32xf32, #tpu.memory_space<vmem>>, vector<12x8xf32>,
      %175 = vector.extract_strided_slice %114 {offsets = [12, 0], sizes = [12, 8], strides = [1, 1]} : vector<24x96xf32> to vector<12x8xf32>
      %176 = vector.extract_strided_slice %114 {offsets = [12, 32], sizes = [12, 8], strides = [1, 1]} : vector<24x96xf32> to vector<12x8xf32>
      %177 = vector.extract_strided_slice %114 {offsets = [12, 64], sizes = [12, 8], strides = [1, 1]} : vector<24x96xf32> to vector<12x8xf32>
      %cst_68 = arith.constant dense<0.000000e+00> : vector<12x12xf32>
      %178 = tpu.matmul %175, %176, %cst_68 {dimension_numbers = #tpu.dot_dimension_numbers<[1], [1], [0], [0], [0, 0, 1, 0], [], []>} : vector<12x8xf32>, vector<12x8xf32>, vector<12x12xf32> -> vector<12x12xf32>
      %cst_69 = arith.constant dense<0xFF800000> : vector<12xf32>
      %179 = vector.multi_reduction <maximumf>, %178, %cst_69 [1] : vector<12x12xf32> to vector<12xf32>
      %180 = vector.shape_cast %179 : vector<12xf32> to vector<12x1xf32>
      %181 = vector.broadcast %180 : vector<12x1xf32> to vector<12x12xf32>
      %182 = arith.subf %178, %181 : vector<12x12xf32>
      %183 = math.exp %182 : vector<12x12xf32>
      %cst_70 = arith.constant dense<0.000000e+00> : vector<12xf32>
      %184 = vector.multi_reduction <add>, %183, %cst_70 [1] : vector<12x12xf32> to vector<12xf32>
      %185 = vector.shape_cast %184 : vector<12xf32> to vector<12x1xf32>
      %186 = vector.broadcast %185 : vector<12x1xf32> to vector<12x12xf32>
      %187 = arith.divf %183, %186 : vector<12x12xf32>
      %cst_71 = arith.constant dense<0.000000e+00> : vector<12x8xf32>
      %188 = tpu.matmul %187, %177, %cst_71 {dimension_numbers = #tpu.dot_dimension_numbers<[1], [0], [0], [1], [0, 0, 1, 1], [], []>} : vector<12x12xf32>, vector<12x8xf32>, vector<12x8xf32> -> vector<12x8xf32>
      %c12 = arith.constant 12 : index
      %c0_72 = arith.constant 0 : index
      %189 = vector.load %arg20[%c12, %c0_72] : memref<24x32xf32, #tpu.memory_space<vmem>>, vector<12x8xf32>
      tpu.vector_store %arg20[%c12, %c0_72], %188 {strides = array<i32>} : memref<24x32xf32, #tpu.memory_space<vmem>>, vector<12x8xf32>,
      %190 = vector.extract_strided_slice %114 {offsets = [12, 8], sizes = [12, 8], strides = [1, 1]} : vector<24x96xf32> to vector<12x8xf32>
      %191 = vector.extract_strided_slice %114 {offsets = [12, 40], sizes = [12, 8], strides = [1, 1]} : vector<24x96xf32> to vector<12x8xf32>
      %192 = vector.extract_strided_slice %114 {offsets = [12, 72], sizes = [12, 8], strides = [1, 1]} : vector<24x96xf32> to vector<12x8xf32>
      %cst_73 = arith.constant dense<0.000000e+00> : vector<12x12xf32>
      %193 = tpu.matmul %190, %191, %cst_73 {dimension_numbers = #tpu.dot_dimension_numbers<[1], [1], [0], [0], [0, 0, 1, 0], [], []>} : vector<12x8xf32>, vector<12x8xf32>, vector<12x12xf32> -> vector<12x12xf32>
      %cst_74 = arith.constant dense<0xFF800000> : vector<12xf32>
      %194 = vector.multi_reduction <maximumf>, %193, %cst_74 [1] : vector<12x12xf32> to vector<12xf32>
      %195 = vector.shape_cast %194 : vector<12xf32> to vector<12x1xf32>
      %196 = vector.broadcast %195 : vector<12x1xf32> to vector<12x12xf32>
      %197 = arith.subf %193, %196 : vector<12x12xf32>
      %198 = math.exp %197 : vector<12x12xf32>
      %cst_75 = arith.constant dense<0.000000e+00> : vector<12xf32>
      %199 = vector.multi_reduction <add>, %198, %cst_75 [1] : vector<12x12xf32> to vector<12xf32>
      %200 = vector.shape_cast %199 : vector<12xf32> to vector<12x1xf32>
      %201 = vector.broadcast %200 : vector<12x1xf32> to vector<12x12xf32>
      %202 = arith.divf %198, %201 : vector<12x12xf32>
      %cst_76 = arith.constant dense<0.000000e+00> : vector<12x8xf32>
      %203 = tpu.matmul %202, %192, %cst_76 {dimension_numbers = #tpu.dot_dimension_numbers<[1], [0], [0], [1], [0, 0, 1, 1], [], []>} : vector<12x12xf32>, vector<12x8xf32>, vector<12x8xf32> -> vector<12x8xf32>
      %c12_77 = arith.constant 12 : index
      %c8_78 = arith.constant 8 : index
      %204 = vector.load %arg20[%c12_77, %c8_78] : memref<24x32xf32, #tpu.memory_space<vmem>>, vector<12x8xf32>
      tpu.vector_store %arg20[%c12_77, %c8_78], %203 {strides = array<i32>} : memref<24x32xf32, #tpu.memory_space<vmem>>, vector<12x8xf32>,
      %205 = vector.extract_strided_slice %114 {offsets = [12, 16], sizes = [12, 8], strides = [1, 1]} : vector<24x96xf32> to vector<12x8xf32>
      %206 = vector.extract_strided_slice %114 {offsets = [12, 48], sizes = [12, 8], strides = [1, 1]} : vector<24x96xf32> to vector<12x8xf32>
      %207 = vector.extract_strided_slice %114 {offsets = [12, 80], sizes = [12, 8], strides = [1, 1]} : vector<24x96xf32> to vector<12x8xf32>
      %cst_79 = arith.constant dense<0.000000e+00> : vector<12x12xf32>
      %208 = tpu.matmul %205, %206, %cst_79 {dimension_numbers = #tpu.dot_dimension_numbers<[1], [1], [0], [0], [0, 0, 1, 0], [], []>} : vector<12x8xf32>, vector<12x8xf32>, vector<12x12xf32> -> vector<12x12xf32>
      %cst_80 = arith.constant dense<0xFF800000> : vector<12xf32>
      %209 = vector.multi_reduction <maximumf>, %208, %cst_80 [1] : vector<12x12xf32> to vector<12xf32>
      %210 = vector.shape_cast %209 : vector<12xf32> to vector<12x1xf32>
      %211 = vector.broadcast %210 : vector<12x1xf32> to vector<12x12xf32>
      %212 = arith.subf %208, %211 : vector<12x12xf32>
      %213 = math.exp %212 : vector<12x12xf32>
      %cst_81 = arith.constant dense<0.000000e+00> : vector<12xf32>
      %214 = vector.multi_reduction <add>, %213, %cst_81 [1] : vector<12x12xf32> to vector<12xf32>
      %215 = vector.shape_cast %214 : vector<12xf32> to vector<12x1xf32>
      %216 = vector.broadcast %215 : vector<12x1xf32> to vector<12x12xf32>
      %217 = arith.divf %213, %216 : vector<12x12xf32>
      %cst_82 = arith.constant dense<0.000000e+00> : vector<12x8xf32>
      %218 = tpu.matmul %217, %207, %cst_82 {dimension_numbers = #tpu.dot_dimension_numbers<[1], [0], [0], [1], [0, 0, 1, 1], [], []>} : vector<12x12xf32>, vector<12x8xf32>, vector<12x8xf32> -> vector<12x8xf32>
      %c12_83 = arith.constant 12 : index
      %c16_84 = arith.constant 16 : index
      %219 = vector.load %arg20[%c12_83, %c16_84] : memref<24x32xf32, #tpu.memory_space<vmem>>, vector<12x8xf32>
      tpu.vector_store %arg20[%c12_83, %c16_84], %218 {strides = array<i32>} : memref<24x32xf32, #tpu.memory_space<vmem>>, vector<12x8xf32>,
      %220 = vector.extract_strided_slice %114 {offsets = [12, 24], sizes = [12, 8], strides = [1, 1]} : vector<24x96xf32> to vector<12x8xf32>
      %221 = vector.extract_strided_slice %114 {offsets = [12, 56], sizes = [12, 8], strides = [1, 1]} : vector<24x96xf32> to vector<12x8xf32>
      %222 = vector.extract_strided_slice %114 {offsets = [12, 88], sizes = [12, 8], strides = [1, 1]} : vector<24x96xf32> to vector<12x8xf32>
      %cst_85 = arith.constant dense<0.000000e+00> : vector<12x12xf32>
      %223 = tpu.matmul %220, %221, %cst_85 {dimension_numbers = #tpu.dot_dimension_numbers<[1], [1], [0], [0], [0, 0, 1, 0], [], []>} : vector<12x8xf32>, vector<12x8xf32>, vector<12x12xf32> -> vector<12x12xf32>
      %cst_86 = arith.constant dense<0xFF800000> : vector<12xf32>
      %224 = vector.multi_reduction <maximumf>, %223, %cst_86 [1] : vector<12x12xf32> to vector<12xf32>
      %225 = vector.shape_cast %224 : vector<12xf32> to vector<12x1xf32>
      %226 = vector.broadcast %225 : vector<12x1xf32> to vector<12x12xf32>
      %227 = arith.subf %223, %226 : vector<12x12xf32>
      %228 = math.exp %227 : vector<12x12xf32>
      %cst_87 = arith.constant dense<0.000000e+00> : vector<12xf32>
      %229 = vector.multi_reduction <add>, %228, %cst_87 [1] : vector<12x12xf32> to vector<12xf32>
      %230 = vector.shape_cast %229 : vector<12xf32> to vector<12x1xf32>
      %231 = vector.broadcast %230 : vector<12x1xf32> to vector<12x12xf32>
      %232 = arith.divf %228, %231 : vector<12x12xf32>
      %cst_88 = arith.constant dense<0.000000e+00> : vector<12x8xf32>
      %233 = tpu.matmul %232, %222, %cst_88 {dimension_numbers = #tpu.dot_dimension_numbers<[1], [0], [0], [1], [0, 0, 1, 1], [], []>} : vector<12x12xf32>, vector<12x8xf32>, vector<12x8xf32> -> vector<12x8xf32>
      %c12_89 = arith.constant 12 : index
      %c24_90 = arith.constant 24 : index
      %234 = vector.load %arg20[%c12_89, %c24_90] : memref<24x32xf32, #tpu.memory_space<vmem>>, vector<12x8xf32>
      tpu.vector_store %arg20[%c12_89, %c24_90], %233 {strides = array<i32>} : memref<24x32xf32, #tpu.memory_space<vmem>>, vector<12x8xf32>,
      %c0_91 = arith.constant 0 : index
      %c0_92 = arith.constant 0 : index
      %235 = vector.load %arg20[%c0_91, %c0_92] : memref<24x32xf32, #tpu.memory_space<vmem>>, vector<24x32xf32>
      %236 = arith.index_cast %arg21 : i32 to index
      %c0_93 = arith.constant 0 : index
      %c0_94 = arith.constant 0 : index
      %237 = vector.load %arg4[%236, %c0_93, %c0_94] : memref<2x32x32xf32, #tpu.memory_space<vmem>>, vector<1x32x32xf32>
      %238 = vector.shape_cast %237 : vector<1x32x32xf32> to vector<32x32xf32>
      %cst_95 = arith.constant dense<0.000000e+00> : vector<24x32xf32>
      %239 = tpu.matmul %235, %238, %cst_95 {dimension_numbers = #tpu.dot_dimension_numbers<[1], [0], [0], [1], [0, 0, 1, 1], [], []>} : vector<24x32xf32>, vector<32x32xf32>, vector<24x32xf32> -> vector<24x32xf32>
      %240 = arith.index_cast %arg21 : i32 to index
      %c0_96 = arith.constant 0 : index
      %c0_97 = arith.constant 0 : index
      %241 = vector.load %arg5[%240, %c0_96, %c0_97] : memref<2x1x32xf32, #tpu.memory_space<vmem>>, vector<1x1x32xf32>
      %242 = vector.shape_cast %241 : vector<1x1x32xf32> to vector<1x32xf32>
      %243 = vector.broadcast %242 : vector<1x32xf32> to vector<24x32xf32>
      %244 = arith.addf %239, %243 : vector<24x32xf32>
      %245 = arith.addf %arg22, %244 : vector<24x32xf32>
      %246 = arith.index_cast %arg21 : i32 to index
      %c0_98 = arith.constant 0 : index
      %c0_99 = arith.constant 0 : index
      %247 = vector.load %arg6[%246, %c0_98, %c0_99] : memref<2x1x32xf32, #tpu.memory_space<vmem>>, vector<1x1x32xf32>
      %248 = vector.shape_cast %247 : vector<1x1x32xf32> to vector<1x32xf32>
      %249 = arith.index_cast %arg21 : i32 to index
      %c0_100 = arith.constant 0 : index
      %c0_101 = arith.constant 0 : index
      %250 = vector.load %arg7[%249, %c0_100, %c0_101] : memref<2x1x32xf32, #tpu.memory_space<vmem>>, vector<1x1x32xf32>
      %251 = vector.shape_cast %250 : vector<1x1x32xf32> to vector<1x32xf32>
      %cst_102 = arith.constant dense<0.000000e+00> : vector<24xf32>
      %252 = vector.multi_reduction <add>, %245, %cst_102 [1] : vector<24x32xf32> to vector<24xf32>
      %253 = vector.shape_cast %252 : vector<24xf32> to vector<24x1xf32>
      %cst_103 = arith.constant 3.200000e+01 : f32
      %254 = vector.broadcast %cst_103 : f32 to vector<24x1xf32>
      %255 = arith.divf %253, %254 : vector<24x1xf32>
      %256 = vector.broadcast %255 : vector<24x1xf32> to vector<24x32xf32>
      %257 = arith.subf %245, %256 : vector<24x32xf32>
      %258 = arith.mulf %257, %257 : vector<24x32xf32>
      %cst_104 = arith.constant dense<0.000000e+00> : vector<24xf32>
      %259 = vector.multi_reduction <add>, %258, %cst_104 [1] : vector<24x32xf32> to vector<24xf32>
      %260 = vector.shape_cast %259 : vector<24xf32> to vector<24x1xf32>
      %cst_105 = arith.constant 3.200000e+01 : f32
      %261 = vector.broadcast %cst_105 : f32 to vector<24x1xf32>
      %262 = arith.divf %260, %261 : vector<24x1xf32>
      %263 = vector.broadcast %255 : vector<24x1xf32> to vector<24x32xf32>
      %264 = arith.subf %245, %263 : vector<24x32xf32>
      %cst_106 = arith.constant 9.99999997E-7 : f32
      %265 = vector.broadcast %cst_106 : f32 to vector<24x1xf32>
      %266 = arith.addf %262, %265 : vector<24x1xf32>
      %267 = math.rsqrt %266 : vector<24x1xf32>
      %268 = vector.broadcast %267 : vector<24x1xf32> to vector<24x32xf32>
      %269 = arith.mulf %264, %268 : vector<24x32xf32>
      %270 = vector.broadcast %248 : vector<1x32xf32> to vector<24x32xf32>
      %271 = arith.mulf %269, %270 : vector<24x32xf32>
      %272 = vector.broadcast %251 : vector<1x32xf32> to vector<24x32xf32>
      %273 = arith.addf %271, %272 : vector<24x32xf32>
      %274 = arith.index_cast %arg21 : i32 to index
      %c0_107 = arith.constant 0 : index
      %c0_108 = arith.constant 0 : index
      %275 = vector.load %arg8[%274, %c0_107, %c0_108] : memref<2x32x128xf32, #tpu.memory_space<vmem>>, vector<1x32x128xf32>
      %276 = vector.shape_cast %275 : vector<1x32x128xf32> to vector<32x128xf32>
      %cst_109 = arith.constant dense<0.000000e+00> : vector<24x128xf32>
      %277 = tpu.matmul %273, %276, %cst_109 {dimension_numbers = #tpu.dot_dimension_numbers<[1], [0], [0], [1], [0, 0, 1, 1], [], []>} : vector<24x32xf32>, vector<32x128xf32>, vector<24x128xf32> -> vector<24x128xf32>
      %278 = arith.index_cast %arg21 : i32 to index
      %c0_110 = arith.constant 0 : index
      %c0_111 = arith.constant 0 : index
      %279 = vector.load %arg9[%278, %c0_110, %c0_111] : memref<2x1x128xf32, #tpu.memory_space<vmem>>, vector<1x1x128xf32>
      %280 = vector.shape_cast %279 : vector<1x1x128xf32> to vector<1x128xf32>
      %281 = vector.broadcast %280 : vector<1x128xf32> to vector<24x128xf32>
      %282 = arith.addf %277, %281 : vector<24x128xf32>
      %cst_112 = arith.constant 0.000000e+00 : f32
      %283 = vector.broadcast %cst_112 : f32 to vector<24x128xf32>
      %284 = arith.maximumf %282, %283 : vector<24x128xf32>
      %285 = arith.index_cast %arg21 : i32 to index
      %c0_113 = arith.constant 0 : index
      %c0_114 = arith.constant 0 : index
      %286 = vector.load %arg10[%285, %c0_113, %c0_114] : memref<2x128x32xf32, #tpu.memory_space<vmem>>, vector<1x128x32xf32>
      %287 = vector.shape_cast %286 : vector<1x128x32xf32> to vector<128x32xf32>
      %cst_115 = arith.constant dense<0.000000e+00> : vector<24x32xf32>
      %288 = tpu.matmul %284, %287, %cst_115 {dimension_numbers = #tpu.dot_dimension_numbers<[1], [0], [0], [1], [0, 0, 1, 1], [], []>} : vector<24x128xf32>, vector<128x32xf32>, vector<24x32xf32> -> vector<24x32xf32>
      %289 = arith.index_cast %arg21 : i32 to index
      %c0_116 = arith.constant 0 : index
      %c0_117 = arith.constant 0 : index
      %290 = vector.load %arg11[%289, %c0_116, %c0_117] : memref<2x1x32xf32, #tpu.memory_space<vmem>>, vector<1x1x32xf32>
      %291 = vector.shape_cast %290 : vector<1x1x32xf32> to vector<1x32xf32>
      %292 = vector.broadcast %291 : vector<1x32xf32> to vector<24x32xf32>
      %293 = arith.addf %288, %292 : vector<24x32xf32>
      %294 = arith.addf %273, %293 : vector<24x32xf32>
      %295 = arith.index_cast %arg21 : i32 to index
      %c0_118 = arith.constant 0 : index
      %c0_119 = arith.constant 0 : index
      %296 = vector.load %arg12[%295, %c0_118, %c0_119] : memref<2x1x32xf32, #tpu.memory_space<vmem>>, vector<1x1x32xf32>
      %297 = vector.shape_cast %296 : vector<1x1x32xf32> to vector<1x32xf32>
      %298 = arith.index_cast %arg21 : i32 to index
      %c0_120 = arith.constant 0 : index
      %c0_121 = arith.constant 0 : index
      %299 = vector.load %arg13[%298, %c0_120, %c0_121] : memref<2x1x32xf32, #tpu.memory_space<vmem>>, vector<1x1x32xf32>
      %300 = vector.shape_cast %299 : vector<1x1x32xf32> to vector<1x32xf32>
      %cst_122 = arith.constant dense<0.000000e+00> : vector<24xf32>
      %301 = vector.multi_reduction <add>, %294, %cst_122 [1] : vector<24x32xf32> to vector<24xf32>
      %302 = vector.shape_cast %301 : vector<24xf32> to vector<24x1xf32>
      %cst_123 = arith.constant 3.200000e+01 : f32
      %303 = vector.broadcast %cst_123 : f32 to vector<24x1xf32>
      %304 = arith.divf %302, %303 : vector<24x1xf32>
      %305 = vector.broadcast %304 : vector<24x1xf32> to vector<24x32xf32>
      %306 = arith.subf %294, %305 : vector<24x32xf32>
      %307 = arith.mulf %306, %306 : vector<24x32xf32>
      %cst_124 = arith.constant dense<0.000000e+00> : vector<24xf32>
      %308 = vector.multi_reduction <add>, %307, %cst_124 [1] : vector<24x32xf32> to vector<24xf32>
      %309 = vector.shape_cast %308 : vector<24xf32> to vector<24x1xf32>
      %cst_125 = arith.constant 3.200000e+01 : f32
      %310 = vector.broadcast %cst_125 : f32 to vector<24x1xf32>
      %311 = arith.divf %309, %310 : vector<24x1xf32>
      %312 = vector.broadcast %304 : vector<24x1xf32> to vector<24x32xf32>
      %313 = arith.subf %294, %312 : vector<24x32xf32>
      %cst_126 = arith.constant 9.99999997E-7 : f32
      %314 = vector.broadcast %cst_126 : f32 to vector<24x1xf32>
      %315 = arith.addf %311, %314 : vector<24x1xf32>
      %316 = math.rsqrt %315 : vector<24x1xf32>
      %317 = vector.broadcast %316 : vector<24x1xf32> to vector<24x32xf32>
      %318 = arith.mulf %313, %317 : vector<24x32xf32>
      %319 = vector.broadcast %297 : vector<1x32xf32> to vector<24x32xf32>
      %320 = arith.mulf %318, %319 : vector<24x32xf32>
      %321 = vector.broadcast %300 : vector<1x32xf32> to vector<24x32xf32>
      %322 = arith.addf %320, %321 : vector<24x32xf32>
      scf.yield %322 : vector<24x32xf32>
    }
    %c2_i32_1 = arith.constant 2 : i32
    %c0_2 = arith.constant 0 : index
    %c0_3 = arith.constant 0 : index
    %3 = vector.load %arg14[%c0_2, %c0_3] : memref<32x96xf32, #tpu.memory_space<vmem>>, vector<32x96xf32>
    %cst = arith.constant dense<0.000000e+00> : vector<24x96xf32>
    %4 = tpu.matmul %2, %3, %cst {dimension_numbers = #tpu.dot_dimension_numbers<[1], [0], [0], [1], [0, 0, 1, 1], [], []>} : vector<24x32xf32>, vector<32x96xf32>, vector<24x96xf32> -> vector<24x96xf32>
    %c0_4 = arith.constant 0 : index
    %c0_5 = arith.constant 0 : index
    %5 = vector.load %arg15[%c0_4, %c0_5] : memref<32x32xf32, #tpu.memory_space<vmem>>, vector<32x32xf32>
    %c0_6 = arith.constant 0 : index
    %c0_7 = arith.constant 0 : index
    %6 = vector.load %arg16[%c0_6, %c0_7] : memref<1x32xf32, #tpu.memory_space<vmem>>, vector<1x32xf32>
    %c0_8 = arith.constant 0 : index
    %c0_9 = arith.constant 0 : index
    %7 = vector.load %arg17[%c0_8, %c0_9] : memref<1x32xf32, #tpu.memory_space<vmem>>, vector<1x32xf32>
    %8 = vector.extract_strided_slice %2 {offsets = [0, 0], sizes = [4, 32], strides = [1, 1]} : vector<24x32xf32> to vector<4x32xf32>
    %9 = vector.extract_strided_slice %4 {offsets = [0, 0], sizes = [4, 32], strides = [1, 1]} : vector<24x96xf32> to vector<4x32xf32>
    %10 = vector.extract_strided_slice %4 {offsets = [4, 32], sizes = [8, 32], strides = [1, 1]} : vector<24x96xf32> to vector<8x32xf32>
    %11 = vector.extract_strided_slice %4 {offsets = [4, 64], sizes = [8, 32], strides = [1, 1]} : vector<24x96xf32> to vector<8x32xf32>
    %cst_10 = arith.constant dense<0.000000e+00> : vector<4x8xf32>
    %12 = tpu.matmul %9, %10, %cst_10 {dimension_numbers = #tpu.dot_dimension_numbers<[1], [1], [0], [0], [0, 0, 1, 0], [], []>} : vector<4x32xf32>, vector<8x32xf32>, vector<4x8xf32> -> vector<4x8xf32>
    %cst_11 = arith.constant dense<0xFF800000> : vector<8xf32>
    %13 = vector.multi_reduction <maximumf>, %12, %cst_11 [0] : vector<4x8xf32> to vector<8xf32>
    %14 = vector.shape_cast %13 : vector<8xf32> to vector<1x8xf32>
    %15 = tpu.iota {dimensions = array<i32: 0>} : vector<4x8xi32>
    %16 = vector.broadcast %14 : vector<1x8xf32> to vector<4x8xf32>
    %17 = arith.cmpf oeq, %12, %16 : vector<4x8xf32>
    %c4_i32 = arith.constant 4 : i32
    %18 = vector.broadcast %c4_i32 : i32 to vector<4x8xi32>
    %19 = arith.select %17, %15, %18 : vector<4x8xi1>, vector<4x8xi32>
    %cst_12 = arith.constant dense<2147483647> : vector<8xi32>
    %20 = vector.multi_reduction <minsi>, %19, %cst_12 [0] : vector<4x8xi32> to vector<8xi32>
    %21 = vector.shape_cast %20 : vector<8xi32> to vector<1x8xi32>
    %22 = vector.broadcast %21 : vector<1x8xi32> to vector<4x8xi32>
    %23 = arith.cmpi eq, %15, %22 : vector<4x8xi32>
    %24 = arith.extui %23 : vector<4x8xi1> to vector<4x8xi32>
    %25 = arith.sitofp %24 : vector<4x8xi32> to vector<4x8xf32>
    %cst_13 = arith.constant dense<0.000000e+00> : vector<4x32xf32>
    %26 = tpu.matmul %25, %11, %cst_13 {dimension_numbers = #tpu.dot_dimension_numbers<[1], [0], [0], [1], [0, 0, 1, 1], [], []>} : vector<4x8xf32>, vector<8x32xf32>, vector<4x32xf32> -> vector<4x32xf32>
    %cst_14 = arith.constant dense<0.000000e+00> : vector<4x32xf32>
    %27 = tpu.matmul %26, %5, %cst_14 {dimension_numbers = #tpu.dot_dimension_numbers<[1], [0], [0], [1], [0, 0, 1, 1], [], []>} : vector<4x32xf32>, vector<32x32xf32>, vector<4x32xf32> -> vector<4x32xf32>
    %28 = arith.addf %27, %8 : vector<4x32xf32>
    %cst_15 = arith.constant dense<0.000000e+00> : vector<4xf32>
    %29 = vector.multi_reduction <add>, %28, %cst_15 [1] : vector<4x32xf32> to vector<4xf32>
    %30 = vector.shape_cast %29 : vector<4xf32> to vector<4x1xf32>
    %cst_16 = arith.constant 3.200000e+01 : f32
    %31 = vector.broadcast %cst_16 : f32 to vector<4x1xf32>
    %32 = arith.divf %30, %31 : vector<4x1xf32>
    %33 = vector.broadcast %32 : vector<4x1xf32> to vector<4x32xf32>
    %34 = arith.subf %28, %33 : vector<4x32xf32>
    %35 = arith.mulf %34, %34 : vector<4x32xf32>
    %cst_17 = arith.constant dense<0.000000e+00> : vector<4xf32>
    %36 = vector.multi_reduction <add>, %35, %cst_17 [1] : vector<4x32xf32> to vector<4xf32>
    %37 = vector.shape_cast %36 : vector<4xf32> to vector<4x1xf32>
    %cst_18 = arith.constant 3.200000e+01 : f32
    %38 = vector.broadcast %cst_18 : f32 to vector<4x1xf32>
    %39 = arith.divf %37, %38 : vector<4x1xf32>
    %40 = vector.broadcast %32 : vector<4x1xf32> to vector<4x32xf32>
    %41 = arith.subf %28, %40 : vector<4x32xf32>
    %cst_19 = arith.constant 9.99999997E-7 : f32
    %42 = vector.broadcast %cst_19 : f32 to vector<4x1xf32>
    %43 = arith.addf %39, %42 : vector<4x1xf32>
    %44 = math.rsqrt %43 : vector<4x1xf32>
    %45 = vector.broadcast %44 : vector<4x1xf32> to vector<4x32xf32>
    %46 = arith.mulf %41, %45 : vector<4x32xf32>
    %47 = vector.broadcast %6 : vector<1x32xf32> to vector<4x32xf32>
    %48 = arith.mulf %46, %47 : vector<4x32xf32>
    %49 = vector.broadcast %7 : vector<1x32xf32> to vector<4x32xf32>
    %50 = arith.addf %48, %49 : vector<4x32xf32>
    %c0_20 = arith.constant 0 : index
    %c0_21 = arith.constant 0 : index
    %c0_22 = arith.constant 0 : index
    %51 = vector.load %arg18[%c0_20, %c0_21, %c0_22] : memref<2x4x32xf32, #tpu.memory_space<vmem>>, vector<1x4x32xf32>
    %52 = vector.shape_cast %51 : vector<1x4x32xf32> to vector<4x32xf32>
    %53 = vector.shape_cast %50 : vector<4x32xf32> to vector<1x4x32xf32>
    tpu.vector_store %arg18[%c0_20, %c0_21, %c0_22], %53 {strides = array<i32>} : memref<2x4x32xf32, #tpu.memory_space<vmem>>, vector<1x4x32xf32>,
    %c0_23 = arith.constant 0 : index
    %c0_24 = arith.constant 0 : index
    %c0_25 = arith.constant 0 : index
    %54 = vector.load %arg19[%c0_23, %c0_24, %c0_25] : memref<2x4x8xf32, #tpu.memory_space<vmem>>, vector<1x4x8xf32>
    %55 = vector.shape_cast %54 : vector<1x4x8xf32> to vector<4x8xf32>
    %56 = vector.shape_cast %25 : vector<4x8xf32> to vector<1x4x8xf32>
    tpu.vector_store %arg19[%c0_23, %c0_24, %c0_25], %56 {strides = array<i32>} : memref<2x4x8xf32, #tpu.memory_space<vmem>>, vector<1x4x8xf32>,
    %57 = vector.extract_strided_slice %2 {offsets = [12, 0], sizes = [4, 32], strides = [1, 1]} : vector<24x32xf32> to vector<4x32xf32>
    %58 = vector.extract_strided_slice %4 {offsets = [12, 0], sizes = [4, 32], strides = [1, 1]} : vector<24x96xf32> to vector<4x32xf32>
    %59 = vector.extract_strided_slice %4 {offsets = [16, 32], sizes = [8, 32], strides = [1, 1]} : vector<24x96xf32> to vector<8x32xf32>
    %60 = vector.extract_strided_slice %4 {offsets = [16, 64], sizes = [8, 32], strides = [1, 1]} : vector<24x96xf32> to vector<8x32xf32>
    %cst_26 = arith.constant dense<0.000000e+00> : vector<4x8xf32>
    %61 = tpu.matmul %58, %59, %cst_26 {dimension_numbers = #tpu.dot_dimension_numbers<[1], [1], [0], [0], [0, 0, 1, 0], [], []>} : vector<4x32xf32>, vector<8x32xf32>, vector<4x8xf32> -> vector<4x8xf32>
    %cst_27 = arith.constant dense<0xFF800000> : vector<8xf32>
    %62 = vector.multi_reduction <maximumf>, %61, %cst_27 [0] : vector<4x8xf32> to vector<8xf32>
    %63 = vector.shape_cast %62 : vector<8xf32> to vector<1x8xf32>
    %64 = tpu.iota {dimensions = array<i32: 0>} : vector<4x8xi32>
    %65 = vector.broadcast %63 : vector<1x8xf32> to vector<4x8xf32>
    %66 = arith.cmpf oeq, %61, %65 : vector<4x8xf32>
    %c4_i32_28 = arith.constant 4 : i32
    %67 = vector.broadcast %c4_i32_28 : i32 to vector<4x8xi32>
    %68 = arith.select %66, %64, %67 : vector<4x8xi1>, vector<4x8xi32>
    %cst_29 = arith.constant dense<2147483647> : vector<8xi32>
    %69 = vector.multi_reduction <minsi>, %68, %cst_29 [0] : vector<4x8xi32> to vector<8xi32>
    %70 = vector.shape_cast %69 : vector<8xi32> to vector<1x8xi32>
    %71 = vector.broadcast %70 : vector<1x8xi32> to vector<4x8xi32>
    %72 = arith.cmpi eq, %64, %71 : vector<4x8xi32>
    %73 = arith.extui %72 : vector<4x8xi1> to vector<4x8xi32>
    %74 = arith.sitofp %73 : vector<4x8xi32> to vector<4x8xf32>
    %cst_30 = arith.constant dense<0.000000e+00> : vector<4x32xf32>
    %75 = tpu.matmul %74, %60, %cst_30 {dimension_numbers = #tpu.dot_dimension_numbers<[1], [0], [0], [1], [0, 0, 1, 1], [], []>} : vector<4x8xf32>, vector<8x32xf32>, vector<4x32xf32> -> vector<4x32xf32>
    %cst_31 = arith.constant dense<0.000000e+00> : vector<4x32xf32>
    %76 = tpu.matmul %75, %5, %cst_31 {dimension_numbers = #tpu.dot_dimension_numbers<[1], [0], [0], [1], [0, 0, 1, 1], [], []>} : vector<4x32xf32>, vector<32x32xf32>, vector<4x32xf32> -> vector<4x32xf32>
    %77 = arith.addf %76, %57 : vector<4x32xf32>
    %cst_32 = arith.constant dense<0.000000e+00> : vector<4xf32>
    %78 = vector.multi_reduction <add>, %77, %cst_32 [1] : vector<4x32xf32> to vector<4xf32>
    %79 = vector.shape_cast %78 : vector<4xf32> to vector<4x1xf32>
    %cst_33 = arith.constant 3.200000e+01 : f32
    %80 = vector.broadcast %cst_33 : f32 to vector<4x1xf32>
    %81 = arith.divf %79, %80 : vector<4x1xf32>
    %82 = vector.broadcast %81 : vector<4x1xf32> to vector<4x32xf32>
    %83 = arith.subf %77, %82 : vector<4x32xf32>
    %84 = arith.mulf %83, %83 : vector<4x32xf32>
    %cst_34 = arith.constant dense<0.000000e+00> : vector<4xf32>
    %85 = vector.multi_reduction <add>, %84, %cst_34 [1] : vector<4x32xf32> to vector<4xf32>
    %86 = vector.shape_cast %85 : vector<4xf32> to vector<4x1xf32>
    %cst_35 = arith.constant 3.200000e+01 : f32
    %87 = vector.broadcast %cst_35 : f32 to vector<4x1xf32>
    %88 = arith.divf %86, %87 : vector<4x1xf32>
    %89 = vector.broadcast %81 : vector<4x1xf32> to vector<4x32xf32>
    %90 = arith.subf %77, %89 : vector<4x32xf32>
    %cst_36 = arith.constant 9.99999997E-7 : f32
    %91 = vector.broadcast %cst_36 : f32 to vector<4x1xf32>
    %92 = arith.addf %88, %91 : vector<4x1xf32>
    %93 = math.rsqrt %92 : vector<4x1xf32>
    %94 = vector.broadcast %93 : vector<4x1xf32> to vector<4x32xf32>
    %95 = arith.mulf %90, %94 : vector<4x32xf32>
    %96 = vector.broadcast %6 : vector<1x32xf32> to vector<4x32xf32>
    %97 = arith.mulf %95, %96 : vector<4x32xf32>
    %98 = vector.broadcast %7 : vector<1x32xf32> to vector<4x32xf32>
    %99 = arith.addf %97, %98 : vector<4x32xf32>
    %c1 = arith.constant 1 : index
    %c0_37 = arith.constant 0 : index
    %c0_38 = arith.constant 0 : index
    %100 = vector.load %arg18[%c1, %c0_37, %c0_38] : memref<2x4x32xf32, #tpu.memory_space<vmem>>, vector<1x4x32xf32>
    %101 = vector.shape_cast %100 : vector<1x4x32xf32> to vector<4x32xf32>
    %102 = vector.shape_cast %99 : vector<4x32xf32> to vector<1x4x32xf32>
    tpu.vector_store %arg18[%c1, %c0_37, %c0_38], %102 {strides = array<i32>} : memref<2x4x32xf32, #tpu.memory_space<vmem>>, vector<1x4x32xf32>,
    %c1_39 = arith.constant 1 : index
    %c0_40 = arith.constant 0 : index
    %c0_41 = arith.constant 0 : index
    %103 = vector.load %arg19[%c1_39, %c0_40, %c0_41] : memref<2x4x8xf32, #tpu.memory_space<vmem>>, vector<1x4x8xf32>
    %104 = vector.shape_cast %103 : vector<1x4x8xf32> to vector<4x8xf32>
    %105 = vector.shape_cast %74 : vector<4x8xf32> to vector<1x4x8xf32>
    tpu.vector_store %arg19[%c1_39, %c0_40, %c0_41], %105 {strides = array<i32>} : memref<2x4x8xf32, #tpu.memory_space<vmem>>, vector<1x4x8xf32>,
    return
  }
  func.func @transform_0(%arg0: i32) -> (i32, i32) {
    %c0_i32 = arith.constant 0 : i32
    %c0_i32_0 = arith.constant 0 : i32
    return %arg0, %c0_i32 : i32, i32
  }
  func.func @transform_1(%arg0: i32) -> (i32, i32, i32) {
    %c0_i32 = arith.constant 0 : i32
    %c0_i32_0 = arith.constant 0 : i32
    %c0_i32_1 = arith.constant 0 : i32
    %c0_i32_2 = arith.constant 0 : i32
    return %c0_i32, %c0_i32_0, %c0_i32_1 : i32, i32, i32
  }
  func.func @transform_2(%arg0: i32) -> (i32, i32, i32) {
    %c0_i32 = arith.constant 0 : i32
    %c0_i32_0 = arith.constant 0 : i32
    %c0_i32_1 = arith.constant 0 : i32
    %c0_i32_2 = arith.constant 0 : i32
    return %c0_i32, %c0_i32_0, %c0_i32_1 : i32, i32, i32
  }
  func.func @transform_3(%arg0: i32) -> (i32, i32, i32) {
    %c0_i32 = arith.constant 0 : i32
    %c0_i32_0 = arith.constant 0 : i32
    %c0_i32_1 = arith.constant 0 : i32
    %c0_i32_2 = arith.constant 0 : i32
    return %c0_i32, %c0_i32_0, %c0_i32_1 : i32, i32, i32
  }
  func.func @transform_4(%arg0: i32) -> (i32, i32, i32) {
    %c0_i32 = arith.constant 0 : i32
    %c0_i32_0 = arith.constant 0 : i32
    %c0_i32_1 = arith.constant 0 : i32
    %c0_i32_2 = arith.constant 0 : i32
    return %c0_i32, %c0_i32_0, %c0_i32_1 : i32, i32, i32
  }
  func.func @transform_5(%arg0: i32) -> (i32, i32, i32) {
    %c0_i32 = arith.constant 0 : i32
    %c0_i32_0 = arith.constant 0 : i32
    %c0_i32_1 = arith.constant 0 : i32
    %c0_i32_2 = arith.constant 0 : i32
    return %c0_i32, %c0_i32_0, %c0_i32_1 : i32, i32, i32
  }
  func.func @transform_6(%arg0: i32) -> (i32, i32, i32) {
    %c0_i32 = arith.constant 0 : i32
    %c0_i32_0 = arith.constant 0 : i32
    %c0_i32_1 = arith.constant 0 : i32
    %c0_i32_2 = arith.constant 0 : i32
    return %c0_i32, %c0_i32_0, %c0_i32_1 : i32, i32, i32
  }
  func.func @transform_7(%arg0: i32) -> (i32, i32, i32) {
    %c0_i32 = arith.constant 0 : i32
    %c0_i32_0 = arith.constant 0 : i32
    %c0_i32_1 = arith.constant 0 : i32
    %c0_i32_2 = arith.constant 0 : i32
    return %c0_i32, %c0_i32_0, %c0_i32_1 : i32, i32, i32
  }
  func.func @transform_8(%arg0: i32) -> (i32, i32, i32) {
    %c0_i32 = arith.constant 0 : i32
    %c0_i32_0 = arith.constant 0 : i32
    %c0_i32_1 = arith.constant 0 : i32
    %c0_i32_2 = arith.constant 0 : i32
    return %c0_i32, %c0_i32_0, %c0_i32_1 : i32, i32, i32
  }
  func.func @transform_9(%arg0: i32) -> (i32, i32, i32) {
    %c0_i32 = arith.constant 0 : i32
    %c0_i32_0 = arith.constant 0 : i32
    %c0_i32_1 = arith.constant 0 : i32
    %c0_i32_2 = arith.constant 0 : i32
    return %c0_i32, %c0_i32_0, %c0_i32_1 : i32, i32, i32
  }
  func.func @transform_10(%arg0: i32) -> (i32, i32, i32) {
    %c0_i32 = arith.constant 0 : i32
    %c0_i32_0 = arith.constant 0 : i32
    %c0_i32_1 = arith.constant 0 : i32
    %c0_i32_2 = arith.constant 0 : i32
    return %c0_i32, %c0_i32_0, %c0_i32_1 : i32, i32, i32
  }
  func.func @transform_11(%arg0: i32) -> (i32, i32, i32) {
    %c0_i32 = arith.constant 0 : i32
    %c0_i32_0 = arith.constant 0 : i32
    %c0_i32_1 = arith.constant 0 : i32
    %c0_i32_2 = arith.constant 0 : i32
    return %c0_i32, %c0_i32_0, %c0_i32_1 : i32, i32, i32
  }
  func.func @transform_12(%arg0: i32) -> (i32, i32, i32) {
    %c0_i32 = arith.constant 0 : i32
    %c0_i32_0 = arith.constant 0 : i32
    %c0_i32_1 = arith.constant 0 : i32
    %c0_i32_2 = arith.constant 0 : i32
    return %c0_i32, %c0_i32_0, %c0_i32_1 : i32, i32, i32
  }
  func.func @transform_13(%arg0: i32) -> (i32, i32) {
    %c0_i32 = arith.constant 0 : i32
    %c0_i32_0 = arith.constant 0 : i32
    %c0_i32_1 = arith.constant 0 : i32
    return %c0_i32, %c0_i32_0 : i32, i32
  }
  func.func @transform_14(%arg0: i32) -> (i32, i32) {
    %c0_i32 = arith.constant 0 : i32
    %c0_i32_0 = arith.constant 0 : i32
    %c0_i32_1 = arith.constant 0 : i32
    return %c0_i32, %c0_i32_0 : i32, i32
  }
  func.func @transform_15(%arg0: i32) -> (i32, i32) {
    %c0_i32 = arith.constant 0 : i32
    %c0_i32_0 = arith.constant 0 : i32
    %c0_i32_1 = arith.constant 0 : i32
    return %c0_i32, %c0_i32_0 : i32, i32
  }
  func.func @transform_16(%arg0: i32) -> (i32, i32) {
    %c0_i32 = arith.constant 0 : i32
    %c0_i32_0 = arith.constant 0 : i32
    %c0_i32_1 = arith.constant 0 : i32
    return %c0_i32, %c0_i32_0 : i32, i32
  }
  func.func @transform_17(%arg0: i32) -> (i32, i32, i32) {
    %c0_i32 = arith.constant 0 : i32
    %c0_i32_0 = arith.constant 0 : i32
    %c0_i32_1 = arith.constant 0 : i32
    return %arg0, %c0_i32, %c0_i32_0 : i32, i32, i32
  }
  func.func @transform_18(%arg0: i32) -> (i32, i32, i32) {
    %c0_i32 = arith.constant 0 : i32
    %c0_i32_0 = arith.constant 0 : i32
    %c0_i32_1 = arith.constant 0 : i32
    return %arg0, %c0_i32, %c0_i32_0 : i32, i32, i32
  }
}

</mosaic_0001>

<bundles_post_ra>
// kernel: tpu_custom_call.1
= control target key start
LH: loop header
LB: loop body
LE: loop exit
PB: predicated region body
PF: predicated region fallthrough
CT: control target
= control target key end

     0   :  { %s4685_s0 = inlined_call_operand.vmem [shape: f32[24,32], index: 0, kind: input, shape index: {}]   ;;  %s4686_s1 = inlined_call_operand.vmem [shape: f32[2,32,96], index: 1, kind: input, shape index: {}]   ;;  %s4687_s2 = inlined_call_operand.vmem [shape: f32[2,1,96], index: 2, kind: input, shape index: {}]   ;;  %s4688_s3 = inlined_call_operand.vmem [shape: f32[2,32,32], index: 3, kind: input, shape index: {}]   ;;  %s4689_s4 = inlined_call_operand.vmem [shape: f32[2,1,32], index: 4, kind: input, shape index: {}]   ;;  %s4690_s5 = inlined_call_operand.vmem [shape: f32[2,1,32], index: 5, kind: input, shape index: {}]   ;;  %s4691_s6 = inlined_call_operand.vmem [shape: f32[2,1,32], index: 6, kind: input, shape index: {}]   ;;  %s4692_s7 = inlined_call_operand.vmem [shape: f32[2,32,128], index: 7, kind: input, shape index: {}]   ;;  %s4693_s8 = inlined_call_operand.vmem [shape: f32[2,1,128], index: 8, kind: input, shape index: {}]   ;;  %s4694_s9 = inlined_call_operand.vmem [shape: f32[2,128,32], index: 9, kind: input, shape index: {}]   ;;  %s4695_s10 = inlined_call_operand.vmem [shape: f32[2,1,32], index: 10, kind: input, shape index: {}]   ;;  %s4696_s11 = inlined_call_operand.vmem [shape: f32[2,1,32], index: 11, kind: input, shape index: {}]   ;;  %s4697_s12 = inlined_call_operand.vmem [shape: f32[2,1,32], index: 12, kind: input, shape index: {}]   ;;  %s4698_s13 = inlined_call_operand.vmem [shape: f32[32,96], index: 13, kind: input, shape index: {}]   ;;  %s4699_s14 = inlined_call_operand.vmem [shape: f32[32,32], index: 14, kind: input, shape index: {}]   ;;  %s4700_s15 = inlined_call_operand.vmem [shape: f32[1,32], index: 15, kind: input, shape index: {}]   ;;  %s4701_s16 = inlined_call_operand.vmem [shape: f32[1,32], index: 16, kind: input, shape index: {}]   ;;  %s4702_s17 = inlined_call_operand.hbm [shape: f32[2,4,32], index: 17, kind: output, shape index: {0}]   ;;  %s4703_s18 = inlined_call_operand.hbm [shape: f32[2,4,8], index: 18, kind: output, shape index: {1}]  }
   0x1   :  { %4705 = sst [smem:[#allocation9_spill]] %s4685_s0 }
   0x2   :  { %4706 = sst [smem:[#allocation10_spill]] %s4686_s1 }
   0x3   :  { %4707 = sst [smem:[#allocation11_spill]] %s4687_s2 }
   0x4   :  { %24 = vsyncpa [#allocation4], 0 }
   0x5   :  { %25 = vsyncpa [#allocation6], 0  ;;  %s4708_s29 = sld [smem:[#allocation9_spill]]  ;;  %s4093_s20 = smov 0  }
   0xb   :  { %v60_v0 = vld [vmem:[%s4708_s29] sm:$0xff]   ;;  %v61_v1 = vld [vmem:[%s4708_s29 + $0x8] sm:$0xff]   ;;  %v62_v2 = vld [vmem:[%s4708_s29 + $0x10] sm:$0xff]  }
   0xc LB: > { %v3957_v3 = vmov 0.0|0.0   ;;  %vm3958_vm0 = vmmov 0   ;;  %v3959_v4 = vmov 0.0   ;;  %s4111_s21 = sshll.u32 %s3955_s20, 5  ;;  %s4709_s23 = sld [smem:[#allocation10_spill]]  ;;  %vm86_vm1 = vcmask 261120   ;;  %s3955_s20 = sphi %s4093_s20, %s68_s20   ;;  %v3951_v0 = vphi %v60_v0, %v4718_v0   ;;  %v3947_v1 = vphi %v61_v1, %v4717_v1   ;;  %v3943_v2 = vphi %v62_v2, %v4716_v2  }
   0xd   : > { %3503 = vmatprep.subr.bf16.mxu0 %v3957_v3  ;;  %3248 = vmatprep.mubr.msk.f32.mxu0 %vm3958_vm0, %v3959_v4  ;;  %s4710_s27 = sld [smem:[#allocation11_spill]]  ;;  %vm182_vm2 = vcmask 64512   ;;  %s3960_s29 = smov 96   ;;  %vm270_vm4 = vcmask 93184   ;;  %vm266_vm5 = vcmask 97280   ;;  %vm301_vm6 = vcmask 1043456  }
   0xe   : > { %vm4148_vm3 = vmpackc.low %vm182_vm2, %vm182_vm2  ;;  %s3961_s30 = smov 64   ;;  %s3962_s0 = smov 88   ;;  %vm3964_vm7 = vmmov 1   ;;  %vm380_vm9 = vcmask 60416   ;;  %vm591_vm10 = vcmask 130112   ;;  %vm804_vm11 = vcmask 195712  }
   0xf   : > { %s3963_s19 = smov 120   ;;  %vm4167_vm8 = vmpackc.low %vm301_vm6, %vm3964_vm7  ;;  %s3965_s1 = smov 56   ;;  %vm1017_vm12 = vcmask 261312   ;;  %vm593_vm13 = vcmask 126016   ;;  %vm806_vm14 = vcmask 191616   ;;  %vm1019_vm15 = vcmask 257216  }
  0x10   : > { %s3966_s22 = smov 80   ;;  %s3967_s2 = smov 112  }
  0x11   : > { %s3970_s25 = smov 48   ;;  %s3971_s26 = smov 40  }
  0x12   : > { %s73_s24 = scalar_lea.vmem %s4709_s23, %s4111_s21  ;;  %s3968_s23 = smov 72  }
  0x13   : > { %v74_v5 = vld [vmem:[%s73_s24] sm:$0xff]  ;;  %v75_v6 = vld [vmem:[%s73_s24 + $0x8] sm:$0xff]  ;;  %v76_v7 = vld [vmem:[%s73_s24 + $0x10] sm:$0xff]  ;;  %s78_s28 = scalar_lea.vmem %s4710_s27, %s3955_s20  ;;  %s3972_s27 = smov 8  }
  0x14   : > { %v3504_v8 = vpack.c.bf16 %v75_v6, %v74_v5  ;;  %v77_v9 = vld [vmem:[%s73_s24 + $0x18] sm:$0xff]  ;;  %v3022_v11 = vld [vmem:[%s78_s28] ss:$0 sm:$0xff]  ;;  %s3969_s24 = smov 104   ;;  %s3973_s28 = smov 16  }
  0x15   : > { %v3507_v10 = vpack.c.bf16 %v77_v9, %v76_v7 }
  0x16   : > { %3505 = vmatpush3.bf16.msra.mxu0 %v3504_v8 }
  0x17   : > { %3506 = vmatprep.subr.bf16.mxu0 %v3957_v3 }
  0x1a   : > { %3508 = vmatpush3.bf16.msra.mxu0 %v3507_v10 }
  0x1d   : > { %3249 = vmatmul.mubr.msk.f32.vlgmr.msra.gmra.mrb[0].mxu0 %vm86_vm1, %v3951_v0 }
  0x1e   : > { %3251 = vmatprep.mubr.msk.f32.mxu0 %vm3958_vm0, %v3959_v4 }
  0x21   : > { %3252 = vmatmul.mubr.msk.f32.gmra.mrb[2].mxu0 %vm86_vm1, %v3947_v1 }
  0x22   : > { %3254 = vmatprep.mubr.msk.f32.mxu0 %vm3958_vm0, %v3959_v4 }
  0x25   : > { %3255 = vmatmul.mubr.msk.f32.gmra.mrb[4].mxu0 %vm86_vm1, %v3943_v2 }
  0xf0   : > { %v162_v12 = vpop.f32.mrb[0].mxu0 }
  0xf1   : > { %v4132_v13 = vadd.f32 %v3022_v11, %v162_v12  ;;  %v3250_v14 = vpop.f32.mrb[1].mxu0 }
  0xf3   : > { %3261 = vmatprep.mubr.msk.f32.mxu0 %vm182_vm2, %v4132_v13 }
  0xf4   : > { %v167_v15 = vpop.f32.mrb[2].mxu0 }
  0xf5   : > { %v4136_v16 = vadd.f32 %v3022_v11, %v167_v15  ;;  %v3253_v17 = vpop.f32.mrb[3].mxu0 }
  0xf7   : > { %v4140_v18 = vpack.i.bf16 %v4136_v16, %v4132_v13 }
  0xf8   : > { %v172_v19 = vpop.f32.mrb[4].mxu0 }
  0xf9   : > { %v4142_v20 = vadd.f32 %v3022_v11, %v172_v19  ;;  %3718 = vrot.lane.b32.xlu0 %v4140_v18, %s3960_s29  ;;  %v3256_v21 = vpop.f32.mrb[5].mxu0 }
 0x16b   : > { %v3719_v22 = vpop.permute.xlu0 %3718 }
 0x16c   : > { %v3721_v23 = vunpack.i.h.bf16 %v3719_v22  ;;  %v3720_v24 = vunpack.i.l.bf16 %v3719_v22 }
 0x16e   : > { %v3509_v26 = vpack.c.bf16 %v3721_v23, %v3720_v24 }
 0x170   : > { %3511 = vmatprep.subr.msk.bf16.mxu0 %vm4148_vm3, %v3509_v26 }
 0x171   : > { %3514 = vmatpush3.bf16.xpose.msk.msra.mxu0 %vm4148_vm3, %v3509_v26 }
 0x178   : > { %3262 = vmatmul.mubr.msk.f32.vlgmr.msra.gmra.mrb[6].mxu0 %vm182_vm2, %v4136_v16 }
 0x24b   : > { %v3263_v27 = vpop.f32.mrb[6].mxu0 }
 0x24c   : > { %v257_v28 = vpop.f32.mrb[7].mxu0  ;;  %v271_v29 = vsel %vm270_vm4, %v3263_v27, -inf }
 0x24d   : > { %272 = vmax.xlane.f32.xlu1 %v271_v29  ;;  %v267_v30 = vsel %vm266_vm5, %v257_v28, -inf }
 0x24e   : > { %268 = vmax.xlane.f32.xlu0 %v267_v30 }
 0x25e   : > { %3723 = vrot.lane.b32.xlu1 %v4140_v18, %s3961_s30 }
 0x262   : > { %3728 = vrot.lane.b32.xlu1 %v4140_v18, %s3962_s0 }
 0x264   : > { %384 = vrot.lane.b32.xlu0 %v4136_v16, %s3963_s19 }
 0x2da   : > { %v273_v31 = vpop.xlane.xlu1 %272 }
 0x2db   : > { %v275_v32 = vsub.f32 %v3263_v27, %v273_v31  ;;  %v269_v33 = vpop.xlane.xlu0 %268 }
 0x2dc   : > { %v274_v34 = vsub.f32 %v257_v28, %v269_v33 }
 0x2dd   : > { %v278_v35 = vmul.f32 1.442695, %v275_v32 }
 0x2de   : > { %v276_v36 = vmul.f32 1.442695, %v274_v34  ;;  %v3724_v37 = vpop.permute.xlu1 %3723 }
 0x2df   : > { %3797 = vpow2.f32 %v278_v35  ;;  %v3726_v38 = vunpack.i.h.bf16 %v3724_v37  ;;  %v3725_v39 = vunpack.i.l.bf16 %v3724_v37  ;;  %v385_v57 = vpop.permute.xlu0 %384 }
 0x2e0   : > { %3799 = vpow2.f32 %v276_v36 }
 0x2e1   : > { %v3515_v41 = vpack.c.bf16 %v3726_v38, %v3725_v39 }
 0x2e2   : > { %v3729_v42 = vpop.permute.xlu1 %3728 }
 0x2e3   : > { %v3731_v43 = vunpack.i.h.bf16 %v3729_v42  ;;  %v3730_v44 = vunpack.i.l.bf16 %v3729_v42  ;;  %3517 = vmatprep.subr.msk.bf16.mxu0 %vm4167_vm8, %v3515_v41 }
 0x2e4   : > { %3520 = vmatpush3.bf16.msk.msra.mxu0 %vm4167_vm8, %v3515_v41 }
 0x2e5   : > { %v3521_v45 = vpack.c.bf16 %v3731_v43, %v3730_v44 }
 0x2e7   : > { %3523 = vmatprep.subr.msk.bf16.mxu0 %vm4148_vm3, %v3521_v45 }
 0x2e9   : > { %v3798_v46 = vpop.eup %3797 }
 0x2ea   : > { %v283_v47 = vsel %vm270_vm4, %v3798_v46, 0.0  ;;  %v3800_v48 = vpop.eup %3799 }
 0x2eb   : > { %284 = vadd.xlane.f32.xlu1 %v283_v47  ;;  %v280_v49 = vsel %vm266_vm5, %v3800_v48, 0.0 }
 0x2ef   : > { %281 = vadd.xlane.f32.xlu1 %v280_v49 }
 0x300   : > { %382 = vrot.lane.b32.xlu1 %v4132_v13, %s3963_s19 }
 0x378   : > { %v285_v50 = vpop.xlane.xlu1 %284 }
 0x379   : > { %3801 = vrcp.f32 %v285_v50 }
 0x37c   : > { %v282_v51 = vpop.xlane.xlu1 %281 }
 0x37d   : > { %3803 = vrcp.f32 %v282_v51 }
 0x380   : > { %v383_v56 = vpop.permute.xlu1 %382 }
 0x383   : > { %v3802_v52 = vpop.eup %3801 }
 0x384   : > { %v289_v55 = vmul.f32 %v3802_v52, %v3798_v46 }
 0x387   : > { %v3804_v53 = vpop.eup %3803 }
 0x388   : > { %v287_v54 = vmul.f32 %v3804_v53, %v3800_v48 }
 0x38a   : > { %3268 = vmatprep.mubr.msk.f32.mxu0 %vm266_vm5, %v287_v54 }
 0x38b   : > { %3269 = vmatmul.mubr.msk.f32.vlgmr.msra.gmra.mrb[8].mxu0 %vm266_vm5, %v289_v55 }
 0x38c   : > { %3526 = vmatpush3.bf16.xpose.msk.msra.mxu0 %vm4148_vm3, %v3521_v45  ;;  %3275 = vmatprep.mubr.msk.f32.mxu0 %vm182_vm2, %v383_v56 }
 0x393   : > { %3276 = vmatmul.mubr.msk.f32.vlgmr.msra.gmra.mrb[10].mxu0 %vm182_vm2, %v385_v57 }
 0x45e   : > { %v3270_v58 = vpop.f32.mrb[8].mxu0 }
 0x45f   : > { %381 = vst.msk [vmem:[#allocation2 + $0x8] sm:$0xf] %vm380_vm9, %v3270_v58  ;;  %v370_v59 = vpop.f32.mrb[9].mxu0 }
 0x460   : > { %379 = vst.msk [vmem:[#allocation2] sm:$0xff] %vm182_vm2, %v370_v59 }
 0x466   : > { %v3277_v60 = vpop.f32.mrb[10].mxu0 }
 0x467   : > { %v464_v61 = vpop.f32.mrb[11].mxu0  ;;  %v476_v62 = vsel %vm270_vm4, %v3277_v60, -inf }
 0x468   : > { %477 = vmax.xlane.f32.xlu0 %v476_v62  ;;  %v473_v63 = vsel %vm266_vm5, %v464_v61, -inf }
 0x469   : > { %474 = vmax.xlane.f32.xlu1 %v473_v63 }
 0x47a   : > { %3733 = vrot.lane.b32.xlu1 %v4140_v18, %s3965_s1 }
 0x47e   : > { %3738 = vrot.lane.b32.xlu0 %v4140_v18, %s3966_s22  ;;  %595 = vrot.lane.b32.xlu1 %v4132_v13, %s3967_s2 }
 0x4f5   : > { %v478_v5 = vpop.xlane.xlu0 %477 }
 0x4f6   : > { %v480_v6 = vsub.f32 %v3277_v60, %v478_v5  ;;  %v475_v7 = vpop.xlane.xlu1 %474 }
 0x4f7   : > { %v479_v8 = vsub.f32 %v464_v61, %v475_v7 }
 0x4f8   : > { %v483_v9 = vmul.f32 1.442695, %v480_v6 }
 0x4f9   : > { %v481_v10 = vmul.f32 1.442695, %v479_v8  ;;  %v3739_v11 = vpop.permute.xlu0 %3738 }
 0x4fa   : > { %3805 = vpow2.f32 %v483_v9  ;;  %v3734_v12 = vpop.permute.xlu1 %3733  ;;  %v3741_v14 = vunpack.i.h.bf16 %v3739_v11  ;;  %v3740_v15 = vunpack.i.l.bf16 %v3739_v11 }
 0x4fb   : > { %v3736_v17 = vunpack.i.h.bf16 %v3734_v12  ;;  %v3735_v19 = vunpack.i.l.bf16 %v3734_v12  ;;  %3807 = vpow2.f32 %v481_v10 }
 0x4fc   : > { %v3533_v22 = vpack.c.bf16 %v3741_v14, %v3740_v15 }
 0x4fd   : > { %v3527_v21 = vpack.c.bf16 %v3736_v17, %v3735_v19 }
 0x4fe   : > { %v596_v28 = vpop.permute.xlu1 %595 }
 0x4ff   : > { %3529 = vmatprep.subr.msk.bf16.mxu1 %vm4167_vm8, %v3527_v21 }
 0x500   : > { %3532 = vmatpush3.bf16.msk.msra.mxu1 %vm4167_vm8, %v3527_v21 }
 0x501   : > { %3535 = vmatprep.subr.msk.bf16.mxu1 %vm4148_vm3, %v3533_v22 }
 0x504   : > { %v3806_v23 = vpop.eup %3805 }
 0x505   : > { %v488_v24 = vsel %vm270_vm4, %v3806_v23, 0.0  ;;  %v3808_v26 = vpop.eup %3807 }
 0x506   : > { %489 = vadd.xlane.f32.xlu1 %v488_v24  ;;  %v485_v27 = vsel %vm266_vm5, %v3808_v26, 0.0 }
 0x50a   : > { %486 = vadd.xlane.f32.xlu1 %v485_v27 }
 0x51b   : > { %597 = vrot.lane.b32.xlu1 %v4136_v16, %s3967_s2 }
 0x593   : > { %v490_v29 = vpop.xlane.xlu1 %489 }
 0x594   : > { %3809 = vrcp.f32 %v490_v29 }
 0x597   : > { %v487_v30 = vpop.xlane.xlu1 %486 }
 0x598   : > { %3811 = vrcp.f32 %v487_v30  ;;  %v4250_v30 = vrot.slane %v4142_v20, 4 }
 0x59b   : > { %v598_v35 = vpop.permute.xlu1 %597 }
 0x59e   : > { %v3810_v31 = vpop.eup %3809 }
 0x59f   : > { %v494_v34 = vmul.f32 %v3810_v31, %v3806_v23  ;;  %v1022_v31 = vrot.slane %v4136_v16, 4 }
 0x5a2   : > { %v3812_v32 = vpop.eup %3811 }
 0x5a3   : > { %v492_v33 = vmul.f32 %v3812_v32, %v3808_v26  ;;  %v4255_v32 = vsel %vm301_vm6, %v1022_v31, %v4250_v30 }
 0x5a5   : > { %3282 = vmatprep.mubr.msk.f32.mxu1 %vm266_vm5, %v492_v33  ;;  %v4259_v33 = vpack.i.bf16 %v4250_v30, %v4255_v32 }
 0x5a6   : > { %3283 = vmatmul.mubr.msk.f32.vlgmr.msra.gmra.mrb[0].mxu1 %vm266_vm5, %v494_v34 }
 0x5a7   : > { %3538 = vmatpush3.bf16.xpose.msk.msra.mxu1 %vm4148_vm3, %v3533_v22  ;;  %3289 = vmatprep.mubr.msk.f32.mxu1 %vm182_vm2, %v596_v28 }
 0x5ae   : > { %3290 = vmatmul.mubr.msk.f32.vlgmr.msra.gmra.mrb[2].mxu1 %vm182_vm2, %v598_v35 }
 0x679   : > { %v4213_v36 = vpop.f32.mrb[0].mxu1 }
 0x67a   : > { %v4215_v37 = vpop.f32.mrb[1].mxu1 }
 0x681   : > { %v3291_v38 = vpop.f32.mrb[2].mxu1 }
 0x682   : > { %v677_v39 = vpop.f32.mrb[3].mxu1  ;;  %v689_v41 = vsel %vm270_vm4, %v3291_v38, -inf }
 0x683   : > { %690 = vmax.xlane.f32.xlu0 %v689_v41  ;;  %v686_v42 = vsel %vm266_vm5, %v677_v39, -inf }
 0x684   : > { %687 = vmax.xlane.f32.xlu1 %v686_v42 }
 0x710   : > { %v691_v43 = vpop.xlane.xlu0 %690 }
 0x711   : > { %v693_v44 = vsub.f32 %v3291_v38, %v691_v43  ;;  %v688_v45 = vpop.xlane.xlu1 %687 }
 0x712   : > { %v692_v46 = vsub.f32 %v677_v39, %v688_v45 }
 0x713   : > { %v696_v47 = vmul.f32 1.442695, %v693_v44 }
 0x714   : > { %v694_v48 = vmul.f32 1.442695, %v692_v46 }
 0x715   : > { %3813 = vpow2.f32 %v696_v47 }
 0x716   : > { %3815 = vpow2.f32 %v694_v48 }
 0x71f   : > { %v3814_v49 = vpop.eup %3813 }
 0x720   : > { %v3816_v50 = vpop.eup %3815  ;;  %v701_v51 = vsel %vm270_vm4, %v3814_v49, 0.0 }
 0x721   : > { %702 = vadd.xlane.f32.xlu1 %v701_v51  ;;  %v698_v52 = vsel %vm266_vm5, %v3816_v50, 0.0 }
 0x722   : > { %699 = vadd.xlane.f32.xlu0 %v698_v52 }
 0x732   : > { %3748 = vrot.lane.b32.xlu1 %v4140_v18, %s3968_s23 }
 0x736   : > { %808 = vrot.lane.b32.xlu1 %v4132_v13, %s3969_s24 }
 0x738   : > { %3743 = vrot.lane.b32.xlu0 %v4140_v18, %s3970_s25 }
 0x73c   : > { %810 = vrot.lane.b32.xlu0 %v4136_v16, %s3969_s24 }
 0x7ae   : > { %v703_v53 = vpop.xlane.xlu1 %702 }
 0x7af   : > { %3817 = vrcp.f32 %v703_v53  ;;  %v700_v54 = vpop.xlane.xlu0 %699 }
 0x7b0   : > { %3819 = vrcp.f32 %v700_v54 }
 0x7b2   : > { %v3749_v55 = vpop.permute.xlu1 %3748 }
 0x7b3   : > { %v3744_v56 = vpop.permute.xlu0 %3743  ;;  %v3751_v57 = vunpack.i.h.bf16 %v3749_v55  ;;  %v3750_v58 = vunpack.i.l.bf16 %v3749_v55 }
 0x7b4   : > { %v3746_v59 = vunpack.i.h.bf16 %v3744_v56  ;;  %v3745_v60 = vunpack.i.l.bf16 %v3744_v56 }
 0x7b5   : > { %v3545_v62 = vpack.c.bf16 %v3751_v57, %v3750_v58 }
 0x7b6   : > { %v3539_v61 = vpack.c.bf16 %v3746_v59, %v3745_v60  ;;  %v809_v7 = vpop.permute.xlu1 %808 }
 0x7b7   : > { %v811_v8 = vpop.permute.xlu0 %810 }
 0x7b8   : > { %3541 = vmatprep.subr.msk.bf16.mxu0 %vm4167_vm8, %v3539_v61 }
 0x7b9   : > { %v3818_v13 = vpop.eup %3817  ;;  %3544 = vmatpush3.bf16.msk.msra.mxu0 %vm4167_vm8, %v3539_v61 }
 0x7ba   : > { %v3820_v63 = vpop.eup %3819  ;;  %3547 = vmatprep.subr.msk.bf16.mxu0 %vm4148_vm3, %v3545_v62  ;;  %v707_v6 = vmul.f32 %v3818_v13, %v3814_v49 }
 0x7bb   : > { %v705_v5 = vmul.f32 %v3820_v63, %v3816_v50 }
 0x7bd   : > { %3296 = vmatprep.mubr.msk.f32.mxu0 %vm266_vm5, %v705_v5 }
 0x7be   : > { %3297 = vmatmul.mubr.msk.f32.vlgmr.msra.gmra.mrb[12].mxu0 %vm266_vm5, %v707_v6 }
 0x7bf   : > { %3303 = vmatprep.mubr.msk.f32.mxu0 %vm182_vm2, %v809_v7 }
 0x7c2   : > { %3550 = vmatpush3.bf16.xpose.msk.msra.mxu0 %vm4148_vm3, %v3545_v62 }
 0x7c9   : > { %3304 = vmatmul.mubr.msk.f32.vlgmr.msra.gmra.mrb[14].mxu0 %vm182_vm2, %v811_v8 }
 0x891   : > { %v4241_v9 = vpop.f32.mrb[12].mxu0 }
 0x892   : > { %v4243_v10 = vpop.f32.mrb[13].mxu0 }
 0x89c   : > { %v3305_v11 = vpop.f32.mrb[14].mxu0 }
 0x89d   : > { %v890_v12 = vpop.f32.mrb[15].mxu0  ;;  %v902_v14 = vsel %vm270_vm4, %v3305_v11, -inf }
 0x89e   : > { %903 = vmax.xlane.f32.xlu0 %v902_v14  ;;  %v899_v15 = vsel %vm266_vm5, %v890_v12, -inf }
 0x89f   : > { %900 = vmax.xlane.f32.xlu1 %v899_v15 }
 0x92b   : > { %v904_v17 = vpop.xlane.xlu0 %903 }
 0x92c   : > { %v906_v19 = vsub.f32 %v3305_v11, %v904_v17  ;;  %v901_v21 = vpop.xlane.xlu1 %900 }
 0x92d   : > { %v905_v22 = vsub.f32 %v890_v12, %v901_v21 }
 0x92e   : > { %v909_v23 = vmul.f32 1.442695, %v906_v19 }
 0x92f   : > { %v907_v24 = vmul.f32 1.442695, %v905_v22 }
 0x930   : > { %3821 = vpow2.f32 %v909_v23 }
 0x931   : > { %3823 = vpow2.f32 %v907_v24 }
 0x93a   : > { %v3822_v26 = vpop.eup %3821 }
 0x93b   : > { %v3824_v27 = vpop.eup %3823  ;;  %v914_v28 = vsel %vm270_vm4, %v3822_v26, 0.0 }
 0x93c   : > { %915 = vadd.xlane.f32.xlu1 %v914_v28  ;;  %v911_v29 = vsel %vm266_vm5, %v3824_v27, 0.0 }
 0x93d   : > { %912 = vadd.xlane.f32.xlu0 %v911_v29 }
 0x94d   : > { %3758 = vrot.lane.b32.xlu1 %v4259_v33, %s3960_s29  ;;  %s3974_s29 = smov 24  }
 0x953   : > { %3753 = vrot.lane.b32.xlu0 %v4140_v18, %s3971_s26 }
 0x9c9   : > { %v916_v34 = vpop.xlane.xlu1 %915 }
 0x9ca   : > { %3825 = vrcp.f32 %v916_v34  ;;  %v913_v20 = vpop.xlane.xlu0 %912 }
 0x9cb   : > { %3827 = vrcp.f32 %v913_v20 }
 0x9cd   : > { %v3759_v16 = vpop.permute.xlu1 %3758 }
 0x9ce   : > { %v3754_v35 = vpop.permute.xlu0 %3753  ;;  %v3761_v38 = vunpack.i.h.bf16 %v3759_v16  ;;  %v3760_v39 = vunpack.i.l.bf16 %v3759_v16 }
 0x9cf   : > { %v3756_v41 = vunpack.i.h.bf16 %v3754_v35  ;;  %v3755_v42 = vunpack.i.l.bf16 %v3754_v35 }
 0x9d0   : > { %v3557_v44 = vpack.c.bf16 %v3761_v38, %v3760_v39 }
 0x9d1   : > { %v3551_v43 = vpack.c.bf16 %v3756_v41, %v3755_v42 }
 0x9d3   : > { %3553 = vmatprep.subr.msk.bf16.mxu1 %vm4167_vm8, %v3551_v43 }
 0x9d4   : > { %v3826_v45 = vpop.eup %3825  ;;  %3556 = vmatpush3.bf16.msk.msra.mxu1 %vm4167_vm8, %v3551_v43 }
 0x9d5   : > { %v3828_v18 = vpop.eup %3827  ;;  %3559 = vmatprep.subr.msk.bf16.mxu1 %vm4148_vm3, %v3557_v44  ;;  %v920_v47 = vmul.f32 %v3826_v45, %v3822_v26 }
 0x9d6   : > { %v918_v46 = vmul.f32 %v3828_v18, %v3824_v27 }
 0x9d8   : > { %3310 = vmatprep.mubr.msk.f32.mxu1 %vm266_vm5, %v918_v46 }
 0x9d9   : > { %3311 = vmatmul.mubr.msk.f32.vlgmr.msra.gmra.mrb[4].mxu1 %vm266_vm5, %v920_v47 }
 0x9da   : > { %3317 = vmatprep.mubr.msk.f32.mxu1 %vm182_vm2, %v4255_v32 }
 0x9dd   : > { %3562 = vmatpush3.bf16.xpose.msk.msra.mxu1 %vm4148_vm3, %v3557_v44 }
 0x9e4   : > { %3318 = vmatmul.mubr.msk.f32.vlgmr.msra.gmra.mrb[6].mxu1 %vm182_vm2, %v4250_v30 }
 0xaac   : > { %v4279_v48 = vpop.f32.mrb[4].mxu1 }
 0xaad   : > { %v4281_v49 = vpop.f32.mrb[5].mxu1 }
 0xab7   : > { %v3319_v50 = vpop.f32.mrb[6].mxu1 }
 0xab8   : > { %v1103_v51 = vpop.f32.mrb[7].mxu1  ;;  %v1115_v52 = vsel %vm270_vm4, %v3319_v50, -inf }
 0xab9   : > { %1116 = vmax.xlane.f32.xlu0 %v1115_v52  ;;  %v1112_v53 = vsel %vm266_vm5, %v1103_v51, -inf }
 0xaba   : > { %1113 = vmax.xlane.f32.xlu1 %v1112_v53 }
 0xb46   : > { %v1117_v54 = vpop.xlane.xlu0 %1116 }
 0xb47   : > { %v1119_v55 = vsub.f32 %v3319_v50, %v1117_v54  ;;  %v1114_v56 = vpop.xlane.xlu1 %1113 }
 0xb48   : > { %v1118_v57 = vsub.f32 %v1103_v51, %v1114_v56 }
 0xb49   : > { %v1122_v58 = vmul.f32 1.442695, %v1119_v55 }
 0xb4a   : > { %v1120_v59 = vmul.f32 1.442695, %v1118_v57 }
 0xb4b   : > { %3829 = vpow2.f32 %v1122_v58 }
 0xb4c   : > { %3831 = vpow2.f32 %v1120_v59 }
 0xb55   : > { %v3830_v60 = vpop.eup %3829 }
 0xb56   : > { %v3832_v61 = vpop.eup %3831  ;;  %v1127_v62 = vsel %vm270_vm4, %v3830_v60, 0.0 }
 0xb57   : > { %1128 = vadd.xlane.f32.xlu1 %v1127_v62  ;;  %v1124_v13 = vsel %vm266_vm5, %v3832_v61, 0.0 }
 0xb58   : > { %1125 = vadd.xlane.f32.xlu0 %v1124_v13 }
 0xb68   : > { %3768 = vrot.lane.b32.xlu1 %v4259_v33, %s3962_s0  ;;  %s3092_s0 = sshll.u32 %s3955_s20, 7 }
 0xb6c   : > { %1224 = vrot.lane.b32.xlu1 %v4255_v32, %s3963_s19 }
 0xb6e   : > { %3763 = vrot.lane.b32.xlu0 %v4259_v33, %s3961_s30  ;;  %s1967_s30 = scalar_lea.vmem %s4691_s6, %s3955_s20 }
 0xb72   : > { %1226 = vrot.lane.b32.xlu0 %v4250_v30, %s3963_s19  ;;  %s1860_s19 = scalar_lea.vmem %s4688_s3, %s4111_s21 }
 0xbe4   : > { %v1129_v63 = vpop.xlane.xlu1 %1128 }
 0xbe5   : > { %3833 = vrcp.f32 %v1129_v63  ;;  %v1126_v5 = vpop.xlane.xlu0 %1125 }
 0xbe6   : > { %3835 = vrcp.f32 %v1126_v5 }
 0xbe8   : > { %v3769_v6 = vpop.permute.xlu1 %3768 }
 0xbe9   : > { %v3764_v7 = vpop.permute.xlu0 %3763  ;;  %v3771_v8 = vunpack.i.h.bf16 %v3769_v6  ;;  %v3770_v11 = vunpack.i.l.bf16 %v3769_v6 }
 0xbea   : > { %v3766_v12 = vunpack.i.h.bf16 %v3764_v7  ;;  %v3765_v14 = vunpack.i.l.bf16 %v3764_v7 }
 0xbeb   : > { %v3569_v17 = vpack.c.bf16 %v3771_v8, %v3770_v11 }
 0xbec   : > { %v3563_v15 = vpack.c.bf16 %v3766_v12, %v3765_v14  ;;  %v1225_v24 = vpop.permute.xlu1 %1224 }
 0xbed   : > { %v1227_v26 = vpop.permute.xlu0 %1226 }
 0xbee   : > { %3565 = vmatprep.subr.msk.bf16.mxu0 %vm4167_vm8, %v3563_v15 }
 0xbef   : > { %v3834_v19 = vpop.eup %3833  ;;  %3568 = vmatpush3.bf16.msk.msra.mxu0 %vm4167_vm8, %v3563_v15 }
 0xbf0   : > { %v3836_v21 = vpop.eup %3835  ;;  %3571 = vmatprep.subr.msk.bf16.mxu0 %vm4148_vm3, %v3569_v17  ;;  %v1133_v23 = vmul.f32 %v3834_v19, %v3830_v60 }
 0xbf1   : > { %v1131_v22 = vmul.f32 %v3836_v21, %v3832_v61 }
 0xbf3   : > { %3324 = vmatprep.mubr.msk.f32.mxu0 %vm266_vm5, %v1131_v22 }
 0xbf4   : > { %3325 = vmatmul.mubr.msk.f32.vlgmr.msra.gmra.mrb[16].mxu0 %vm266_vm5, %v1133_v23 }
 0xbf5   : > { %3331 = vmatprep.mubr.msk.f32.mxu0 %vm182_vm2, %v1225_v24 }
 0xbf8   : > { %3574 = vmatpush3.bf16.xpose.msk.msra.mxu0 %vm4148_vm3, %v3569_v17 }
 0xbff   : > { %3332 = vmatmul.mubr.msk.f32.vlgmr.msra.gmra.mrb[18].mxu0 %vm182_vm2, %v1227_v26 }
 0xcc7   : > { %v3326_v27 = vpop.f32.mrb[16].mxu0 }
 0xcc8   : > { %1223 = vst.msk [vmem:[#allocation2 + $0x14] sm:$0xf] %vm380_vm9, %v3326_v27  ;;  %v1213_v28 = vpop.f32.mrb[17].mxu0 }
 0xcc9   : > { %1222 = vst.msk [vmem:[#allocation2 + $0xc] sm:$0xff] %vm182_vm2, %v1213_v28 }
 0xcd2   : > { %v3333_v29 = vpop.f32.mrb[18].mxu0 }
 0xcd3   : > { %v1306_v31 = vpop.f32.mrb[19].mxu0  ;;  %v1318_v34 = vsel %vm270_vm4, %v3333_v29, -inf }
 0xcd4   : > { %1319 = vmax.xlane.f32.xlu0 %v1318_v34  ;;  %v1315_v20 = vsel %vm266_vm5, %v1306_v31, -inf }
 0xcd5   : > { %1316 = vmax.xlane.f32.xlu1 %v1315_v20 }
 0xd61   : > { %v1320_v16 = vpop.xlane.xlu0 %1319 }
 0xd62   : > { %v1322_v35 = vsub.f32 %v3333_v29, %v1320_v16  ;;  %v1317_v38 = vpop.xlane.xlu1 %1316 }
 0xd63   : > { %v1321_v39 = vsub.f32 %v1306_v31, %v1317_v38 }
 0xd64   : > { %v1325_v41 = vmul.f32 1.442695, %v1322_v35 }
 0xd65   : > { %v1323_v42 = vmul.f32 1.442695, %v1321_v39 }
 0xd66   : > { %3837 = vpow2.f32 %v1325_v41 }
 0xd67   : > { %3839 = vpow2.f32 %v1323_v42 }
 0xd70   : > { %v3838_v43 = vpop.eup %3837 }
 0xd71   : > { %v3840_v44 = vpop.eup %3839  ;;  %v1330_v45 = vsel %vm270_vm4, %v3838_v43, 0.0 }
 0xd72   : > { %1331 = vadd.xlane.f32.xlu1 %v1330_v45  ;;  %v1327_v18 = vsel %vm266_vm5, %v3840_v44, 0.0 }
 0xd73   : > { %1328 = vadd.xlane.f32.xlu0 %v1327_v18 }
 0xd83   : > { %3778 = vrot.lane.b32.xlu1 %v4259_v33, %s3966_s22  ;;  %s4475_s22 = scalar_lea.vmem %s4694_s9, %s3092_s0 }
 0xd87   : > { %1435 = vrot.lane.b32.xlu1 %v4255_v32, %s3967_s2 }
 0xd89   : > { %3773 = vrot.lane.b32.xlu0 %v4259_v33, %s3965_s1 }
 0xd8d   : > { %1437 = vrot.lane.b32.xlu0 %v4250_v30, %s3967_s2  ;;  %s1865_s2 = scalar_lea.vmem %s4689_s4, %s3955_s20 }
 0xdff   : > { %v1332_v46 = vpop.xlane.xlu1 %1331 }
 0xe00   : > { %3841 = vrcp.f32 %v1332_v46  ;;  %v1329_v47 = vpop.xlane.xlu0 %1328 }
 0xe01   : > { %3843 = vrcp.f32 %v1329_v47 }
 0xe03   : > { %v3779_v50 = vpop.permute.xlu1 %3778 }
 0xe04   : > { %v3774_v51 = vpop.permute.xlu0 %3773  ;;  %v3781_v52 = vunpack.i.h.bf16 %v3779_v50  ;;  %v3780_v53 = vunpack.i.l.bf16 %v3779_v50 }
 0xe05   : > { %v3776_v54 = vunpack.i.h.bf16 %v3774_v51  ;;  %v3775_v55 = vunpack.i.l.bf16 %v3774_v51 }
 0xe06   : > { %v3581_v57 = vpack.c.bf16 %v3781_v52, %v3780_v53 }
 0xe07   : > { %v3575_v56 = vpack.c.bf16 %v3776_v54, %v3775_v55  ;;  %v1436_v62 = vpop.permute.xlu1 %1435 }
 0xe08   : > { %v1438_v13 = vpop.permute.xlu0 %1437 }
 0xe09   : > { %3577 = vmatprep.subr.msk.bf16.mxu1 %vm4167_vm8, %v3575_v56 }
 0xe0a   : > { %v3842_v58 = vpop.eup %3841  ;;  %3580 = vmatpush3.bf16.msk.msra.mxu1 %vm4167_vm8, %v3575_v56 }
 0xe0b   : > { %v3844_v59 = vpop.eup %3843  ;;  %3583 = vmatprep.subr.msk.bf16.mxu1 %vm4148_vm3, %v3581_v57  ;;  %v1336_v61 = vmul.f32 %v3842_v58, %v3838_v43 }
 0xe0c   : > { %v1334_v60 = vmul.f32 %v3844_v59, %v3840_v44 }
 0xe0e   : > { %3338 = vmatprep.mubr.msk.f32.mxu1 %vm266_vm5, %v1334_v60 }
 0xe0f   : > { %3339 = vmatmul.mubr.msk.f32.vlgmr.msra.gmra.mrb[8].mxu1 %vm266_vm5, %v1336_v61 }
 0xe10   : > { %3345 = vmatprep.mubr.msk.f32.mxu1 %vm182_vm2, %v1436_v62 }
 0xe13   : > { %3586 = vmatpush3.bf16.xpose.msk.msra.mxu1 %vm4148_vm3, %v3581_v57 }
 0xe1a   : > { %3346 = vmatmul.mubr.msk.f32.vlgmr.msra.gmra.mrb[10].mxu1 %vm182_vm2, %v1438_v13  ;;  %v1861_v13 = vld [vmem:[%s1860_s19] sm:$0xff] }
 0xee2   : > { %v4333_v63 = vpop.f32.mrb[8].mxu1 }
 0xee3   : > { %v4335_v5 = vpop.f32.mrb[9].mxu1 }
 0xeed   : > { %v3347_v6 = vpop.f32.mrb[10].mxu1 }
 0xeee   : > { %v1517_v7 = vpop.f32.mrb[11].mxu1  ;;  %v1529_v8 = vsel %vm270_vm4, %v3347_v6, -inf }
 0xeef   : > { %1530 = vmax.xlane.f32.xlu0 %v1529_v8  ;;  %v1526_v11 = vsel %vm266_vm5, %v1517_v7, -inf }
 0xef0   : > { %1527 = vmax.xlane.f32.xlu1 %v1526_v11 }
 0xf7c   : > { %v1531_v12 = vpop.xlane.xlu0 %1530 }
 0xf7d   : > { %v1533_v14 = vsub.f32 %v3347_v6, %v1531_v12  ;;  %v1528_v15 = vpop.xlane.xlu1 %1527 }
 0xf7e   : > { %v1532_v17 = vsub.f32 %v1517_v7, %v1528_v15  ;;  %v1863_v15 = vld [vmem:[%s1860_s19 + $0x10] sm:$0xff] }
 0xf7f   : > { %v1536_v19 = vmul.f32 1.442695, %v1533_v14 }
 0xf80   : > { %v1534_v21 = vmul.f32 1.442695, %v1532_v17  ;;  %v1864_v17 = vld [vmem:[%s1860_s19 + $0x18] sm:$0xff] }
 0xf81   : > { %3845 = vpow2.f32 %v1536_v19 }
 0xf82   : > { %3847 = vpow2.f32 %v1534_v21  ;;  %v3609_v21 = vpack.c.bf16 %v1864_v17, %v1863_v15  ;;  %v2135_v15 = vld [vmem:[%s4475_s22 + $0x8] sm:$0xff]  ;;  %v2136_v17 = vld [vmem:[%s4475_s22 + $0x10] sm:$0xff] }
 0xf8b   : > { %v3846_v22 = vpop.eup %3845 }
 0xf8c   : > { %v3848_v23 = vpop.eup %3847  ;;  %v1541_v24 = vsel %vm270_vm4, %v3846_v22, 0.0 }
 0xf8d   : > { %1542 = vadd.xlane.f32.xlu1 %v1541_v24  ;;  %v1538_v26 = vsel %vm266_vm5, %v3848_v23, 0.0 }
 0xf8e   : > { %1539 = vadd.xlane.f32.xlu0 %v1538_v26 }
 0xf9e   : > { %3788 = vrot.lane.b32.xlu1 %v4259_v33, %s3968_s23 }
 0xfa2   : > { %1646 = vrot.lane.b32.xlu1 %v4255_v32, %s3969_s24 }
 0xfa4   : > { %3783 = vrot.lane.b32.xlu0 %v4259_v33, %s3970_s25  ;;  %s2027_s25 = scalar_lea.vmem %s4692_s7, %s4111_s21 }
 0xfa8   : > { %1648 = vrot.lane.b32.xlu0 %v4250_v30, %s3969_s24  ;;  %s2032_s24 = scalar_lea.vmem %s4693_s8, %s3955_s20 }
0x101a   : > { %v1543_v27 = vpop.xlane.xlu1 %1542 }
0x101b   : > { %3849 = vrcp.f32 %v1543_v27  ;;  %v1540_v28 = vpop.xlane.xlu0 %1539 }
0x101c   : > { %3851 = vrcp.f32 %v1540_v28 }
0x101e   : > { %v3789_v29 = vpop.permute.xlu1 %3788 }
0x101f   : > { %v3784_v31 = vpop.permute.xlu0 %3783  ;;  %v3791_v34 = vunpack.i.h.bf16 %v3789_v29  ;;  %v3790_v20 = vunpack.i.l.bf16 %v3789_v29 }
0x1020   : > { %v3786_v16 = vunpack.i.h.bf16 %v3784_v31  ;;  %v3785_v35 = vunpack.i.l.bf16 %v3784_v31  ;;  %v3082_v31 = vld [vmem:[%s1865_s2] ss:$0 sm:$0xff] }
0x1021   : > { %v3593_v39 = vpack.c.bf16 %v3791_v34, %v3790_v20 }
0x1022   : > { %v3587_v38 = vpack.c.bf16 %v3786_v16, %v3785_v35  ;;  %v1647_v43 = vpop.permute.xlu1 %1646 }
0x1023   : > { %v1649_v44 = vpop.permute.xlu0 %1648 }
0x1024   : > { %3589 = vmatprep.subr.msk.bf16.mxu0 %vm4167_vm8, %v3587_v38 }
0x1025   : > { %v3850_v32 = vpop.eup %3849  ;;  %3592 = vmatpush3.bf16.msk.msra.mxu0 %vm4167_vm8, %v3587_v38 }
0x1026   : > { %v3852_v30 = vpop.eup %3851  ;;  %3595 = vmatprep.subr.msk.bf16.mxu0 %vm4148_vm3, %v3593_v39  ;;  %v1547_v42 = vmul.f32 %v3850_v32, %v3846_v22 }
0x1027   : > { %v1545_v41 = vmul.f32 %v3852_v30, %v3848_v23 }
0x1029   : > { %3352 = vmatprep.mubr.msk.f32.mxu0 %vm266_vm5, %v1545_v41 }
0x102a   : > { %3353 = vmatmul.mubr.msk.f32.vlgmr.msra.gmra.mrb[20].mxu0 %vm266_vm5, %v1547_v42 }
0x102b   : > { %3359 = vmatprep.mubr.msk.f32.mxu0 %vm182_vm2, %v1647_v43 }
0x102e   : > { %3598 = vmatpush3.bf16.xpose.msk.msra.mxu0 %vm4148_vm3, %v3593_v39 }
0x102f   : > { %3611 = vmatprep.subr.bf16.mxu0 %v3957_v3 }
0x1035   : > { %3360 = vmatmul.mubr.msk.f32.vlgmr.msra.gmra.mrb[22].mxu0 %vm182_vm2, %v1649_v44 }
0x1036   : > { %3394 = vmatprep.mubr.msk.f32.mxu0 %vm3958_vm0, %v3959_v4 }
0x10fd   : > { %v4364_v45 = vpop.f32.mrb[20].mxu0 }
0x10fe   : > { %v1627_v18 = vpop.f32.mrb[21].mxu0 }
0x1108   : > { %v3361_v46 = vpop.f32.mrb[22].mxu0 }
0x1109   : > { %v1728_v47 = vpop.f32.mrb[23].mxu0  ;;  %v1740_v50 = vsel %vm270_vm4, %v3361_v46, -inf }
0x110a   : > { %1741 = vmax.xlane.f32.xlu0 %v1740_v50  ;;  %v1737_v51 = vsel %vm266_vm5, %v1728_v47, -inf }
0x110b   : > { %1738 = vmax.xlane.f32.xlu1 %v1737_v51 }
0x1197   : > { %v1742_v25 = vpop.xlane.xlu0 %1741 }
0x1198   : > { %v1744_v52 = vsub.f32 %v3361_v46, %v1742_v25  ;;  %v1739_v53 = vpop.xlane.xlu1 %1738 }
0x1199   : > { %v1743_v54 = vsub.f32 %v1728_v47, %v1739_v53 }
0x119a   : > { %v1747_v55 = vmul.f32 1.442695, %v1744_v52 }
0x119b   : > { %v1745_v56 = vmul.f32 1.442695, %v1743_v54 }
0x119c   : > { %3853 = vpow2.f32 %v1747_v55  ;;  %v2029_v55 = vld [vmem:[%s2027_s25 + $0x8] sm:$0xff] }
0x119d   : > { %3855 = vpow2.f32 %v1745_v56 }
0x11a6   : > { %v3854_v57 = vpop.eup %3853 }
0x11a7   : > { %v3856_v58 = vpop.eup %3855  ;;  %v1752_v59 = vsel %vm270_vm4, %v3854_v57, 0.0 }
0x11a8   : > { %1753 = vadd.xlane.f32.xlu1 %v1752_v59  ;;  %v1749_v60 = vsel %vm266_vm5, %v3856_v58, 0.0 }
0x11a9   : > { %1750 = vadd.xlane.f32.xlu0 %v1749_v60 }
0x11b9   : > { %585 = vrot.lane.b32.xlu1 %v4215_v37, %s3972_s27 }
0x11bd   : > { %798 = vrot.lane.b32.xlu1 %v4243_v10, %s3973_s28 }
0x11bf   : > { %3793 = vrot.lane.b32.xlu0 %v4259_v33, %s3971_s26  ;;  %s2150_s26 = scalar_lea.vmem %s4695_s10, %s3955_s20 }
0x11c1   : > { %587 = vrot.lane.b32.xlu1 %v4213_v36, %s3972_s27 }
0x11c3   : > { %1011 = vrot.lane.b32.xlu0 %v4281_v49, %s3974_s29 }
0x11c5   : > { %800 = vrot.lane.b32.xlu1 %v4241_v9, %s3973_s28 }
0x11c7   : > { %1427 = vrot.lane.b32.xlu0 %v4335_v5, %s3972_s27 }
0x11c9   : > { %1013 = vrot.lane.b32.xlu1 %v4279_v48, %s3974_s29 }
0x11cb   : > { %1638 = vrot.lane.b32.xlu0 %v1627_v18, %s3973_s28 }
0x11cd   : > { %1429 = vrot.lane.b32.xlu1 %v4333_v63, %s3972_s27  ;;  %v1862_v63 = vld [vmem:[%s1860_s19 + $0x8] sm:$0xff]  ;;  %s1965_s27 = scalar_lea.vmem %s4690_s5, %s3955_s20  ;;  %s2243_s19 = scalar_lea.vmem %s4697_s12, %s3955_s20 }
0x11ce   : > { %v3606_v12 = vpack.c.bf16 %v1862_v63, %v1861_v13 }
0x1235   : > { %v1754_v37 = vpop.xlane.xlu1 %1753 }
0x1236   : > { %3857 = vrcp.f32 %v1754_v37  ;;  %v1751_v36 = vpop.xlane.xlu0 %1750 }
0x1237   : > { %3859 = vrcp.f32 %v1751_v36 }
0x1239   : > { %v586_v10 = vpop.permute.xlu1 %585 }
0x123a   : > { %592 = vst.msk [vmem:[#allocation2] sm:$0xff] %vm591_vm10, %v586_v10  ;;  %v3794_v33 = vpop.permute.xlu0 %3793 }
0x123b   : > { %v3796_v9 = vunpack.i.h.bf16 %v3794_v33  ;;  %v3795_v49 = vunpack.i.l.bf16 %v3794_v33 }
0x123d   : > { %v3599_v48 = vpack.c.bf16 %v3796_v9, %v3795_v49  ;;  %v799_v61 = vpop.permute.xlu1 %798 }
0x123e   : > { %805 = vst.msk [vmem:[#allocation2] sm:$0xff] %vm804_vm11, %v799_v61  ;;  %v1012_v62 = vpop.permute.xlu0 %1011 }
0x123f   : > { %1018 = vst.msk [vmem:[#allocation2] sm:$0xff] %vm1017_vm12, %v1012_v62  ;;  %3601 = vmatprep.subr.msk.bf16.mxu1 %vm4167_vm8, %v3599_v48 }
0x1240   : > { %v3858_v5 = vpop.eup %3857  ;;  %3604 = vmatpush3.bf16.msk.msra.mxu1 %vm4167_vm8, %v3599_v48 }
0x1241   : > { %v3860_v6 = vpop.eup %3859  ;;  %v588_v7 = vpop.permute.xlu1 %587  ;;  %3605 = vmatprep.subr.bf16.mxu1 %v3957_v3  ;;  %v1758_v14 = vmul.f32 %v3858_v5, %v3854_v57  ;;  %v2030_v57 = vld [vmem:[%s2027_s25 + $0x10] sm:$0xff] }
0x1242   : > { %594 = vst.msk [vmem:[#allocation2 + $0x8] sm:$0xf] %vm593_vm13, %v588_v7  ;;  %v1428_v8 = vpop.permute.xlu0 %1427  ;;  %v1756_v11 = vmul.f32 %v3860_v6, %v3856_v58  ;;  %v2031_v58 = vld [vmem:[%s2027_s25 + $0x18] sm:$0xff]  ;;  %v4459_v6 = vld [vmem:[%s1965_s27] ss:$0 sm:$0xff] }
0x1243   : > { %1433 = vst.msk [vmem:[#allocation2 + $0xc] sm:$0xff] %vm591_vm10, %v1428_v8  ;;  %v4461_v8 = vld [vmem:[%s1967_s30] ss:$0 sm:$0xff] }
0x1244   : > { %3366 = vmatprep.mubr.msk.f32.mxu1 %vm266_vm5, %v1756_v11 }
0x1245   : > { %3367 = vmatmul.mubr.msk.f32.vlgmr.msra.gmra.mrb[12].mxu1 %vm266_vm5, %v1758_v14  ;;  %v801_v40 = vpop.permute.xlu1 %800  ;;  %v2134_v14 = vld [vmem:[%s4475_s22] sm:$0xff] }
0x1246   : > { %3607 = vmatpush3.bf16.msra.mxu1 %v3606_v12  ;;  %807 = vst.msk [vmem:[#allocation2 + $0x8] sm:$0xf] %vm806_vm14, %v801_v40  ;;  %v1639_v19 = vpop.permute.xlu0 %1638  ;;  %3377 = vmatprep.mubr.msk.f32.mxu1 %vm3958_vm0, %v3959_v4  ;;  %v1857_v23 = vld [vmem:[#allocation2] sm:$0xff]  ;;  %v3618_v40 = vpack.c.bf16 %v2135_v15, %v2134_v14 }
0x1247   : > { %1644 = vst.msk [vmem:[#allocation2 + $0xc] sm:$0xff] %vm804_vm11, %v1639_v19  ;;  %3608 = vmatprep.subr.bf16.mxu1 %v3957_v3  ;;  %v2137_v19 = vld [vmem:[%s4475_s22 + $0x18] sm:$0xff] }
0x1249   : > { %v1014_v22 = vpop.permute.xlu1 %1013 }
0x124a   : > { %3610 = vmatpush3.bf16.msra.mxu1 %v3609_v21  ;;  %1020 = vst.msk [vmem:[#allocation2 + $0x8] sm:$0xf] %vm1019_vm15, %v1014_v22  ;;  %v3621_v21 = vpack.c.bf16 %v2137_v19, %v2136_v17  ;;  %v2138_v22 = vld [vmem:[%s4475_s22 + $0x20] sm:$0xff] }
0x124b   : > { %3617 = vmatprep.subr.bf16.mxu1 %v3957_v3 }
0x124d   : > { %3378 = vmatmul.mubr.msk.f32.vlgmr.msra.gmra.mrb[14].mxu1 %vm86_vm1, %v1857_v23  ;;  %v1430_v24 = vpop.permute.xlu1 %1429  ;;  %v2139_v23 = vld [vmem:[%s4475_s22 + $0x28] sm:$0xff] }
0x124e   : > { %1434 = vst.msk [vmem:[#allocation2 + $0x14] sm:$0xf] %vm593_vm13, %v1430_v24  ;;  %3380 = vmatprep.mubr.msk.f32.mxu1 %vm3958_vm0, %v3959_v4  ;;  %3619 = vmatpush3.bf16.msra.mxu1 %v3618_v40  ;;  %v3624_v24 = vpack.c.bf16 %v2139_v23, %v2138_v22 }
0x124f   : > { %3620 = vmatprep.subr.bf16.mxu1 %v3957_v3 }
0x1252   : > { %3622 = vmatpush3.bf16.msra.mxu1 %v3621_v21 }
0x1253   : > { %3623 = vmatprep.subr.bf16.mxu1 %v3957_v3 }
0x1256   : > { %3625 = vmatpush3.bf16.msra.mxu1 %v3624_v24 }
0x1257   : > { %3626 = vmatprep.subr.bf16.mxu1 %v3957_v3 }
0x1318   : > { %v3368_v26 = vpop.f32.mrb[12].mxu1 }
0x1319   : > { %1851 = vrot.lane.b32.xlu1 %v3368_v26, %s3974_s29  ;;  %v1838_v27 = vpop.f32.mrb[13].mxu1  ;;  %v2140_v26 = vld [vmem:[%s4475_s22 + $0x30] sm:$0xff] }
0x131a   : > { %1849 = vrot.lane.b32.xlu0 %v1838_v27, %s3974_s29  ;;  %v2141_v27 = vld [vmem:[%s4475_s22 + $0x38] sm:$0xff]  ;;  %s2241_s29 = scalar_lea.vmem %s4696_s11, %s3955_s20  ;;  %s68_s20 = sadd.s32 1, %s3955_s20  }
0x131b   : > { %p65_p0 = scmp.ge.s32.totalorder %s68_s20, 2  }
0x131c   :  { %s3978_s3 = smov (%p65_p0), 96   ;;  %s3979_s4 = smov (%p65_p0), 64   ;;  %vm2659_vm8 = vcmask (%p65_p0), 257024  }
0x131e   : > { %1640 = vrot.lane.b32.xlu0 %v4364_v45, %s3973_s28 }
0x1320   : > { %v1948_v28 = vpop.f32.mrb[14].mxu1 }
0x1321   : > { %v3379_v29 = vpop.f32.mrb[15].mxu1  ;;  %v1949_v34 = vadd.f32 %v3082_v31, %v1948_v28  ;;  %v3627_v28 = vpack.c.bf16 %v2141_v27, %v2140_v26 }
0x1322   : > { %v2142_v29 = vld [vmem:[%s4475_s22 + $0x40] sm:$0xff] }
0x1323   : > { %v1962_v20 = vadd.f32 %v3951_v0, %v1949_v34  ;;  %3628 = vmatpush3.bf16.msra.mxu1 %v3627_v28 }
0x1324   : > { %3629 = vmatprep.subr.bf16.mxu1 %v3957_v3 }
0x1325   : > { %v1969_v16 = vsel %vm86_vm1, %v1962_v20, 0.0 }
0x133d   : > { %1970 = vadd.xlane.f32.xlu0 %v1969_v16  ;;  %v2145_v16 = vld [vmem:[%s4475_s22 + $0x58] sm:$0xff] }
0x138b   : > { %v1852_v39 = vpop.permute.xlu1 %1851 }
0x138c   : > { %v1850_v35 = vpop.permute.xlu0 %1849 }
0x138d   : > { %1855 = vst.msk [vmem:[#allocation2 + $0xc] sm:$0xff] %vm1017_vm12, %v1850_v35 }
0x1390   : > { %v1641_v38 = vpop.permute.xlu0 %1640 }
0x1391   : > { %1645 = vst.msk [vmem:[#allocation2 + $0x14] sm:$0xf] %vm806_vm14, %v1641_v38  ;;  %v2146_v38 = vld [vmem:[%s4475_s22 + $0x60] sm:$0xff] }
0x1392   : > { %1856 = vst.msk [vmem:[#allocation2 + $0x14] sm:$0xf] %vm1019_vm15, %v1852_v39  ;;  %v2147_v39 = vld [vmem:[%s4475_s22 + $0x68] sm:$0xff] }
0x1394   : > { %v1858_v32 = vld [vmem:[#allocation2 + $0x8] sm:$0xff] }
0x1395   : > { %3381 = vmatmul.mubr.msk.f32.gmra.mrb[16].mxu1 %vm86_vm1, %v1858_v32  ;;  %v3636_v32 = vpack.c.bf16 %v2147_v39, %v2146_v38 }
0x1396   : > { %3383 = vmatprep.mubr.msk.f32.mxu1 %vm3958_vm0, %v3959_v4 }
0x1399   : > { %v1859_v30 = vld [vmem:[#allocation2 + $0x10] sm:$0xff] }
0x139a   : > { %3384 = vmatmul.mubr.msk.f32.gmra.mrb[18].mxu1 %vm86_vm1, %v1859_v30  ;;  %v2148_v30 = vld [vmem:[%s4475_s22 + $0x70] sm:$0xff] }
0x139b   : > { %3435 = vmatprep.mubr.msk.f32.mxu1 %vm3958_vm0, %v3959_v4 }
0x13ca   : > { %v1971_v0 = vpop.xlane.xlu0 %1970 }
0x13cb   : > { %v1979_v44 = vmul.f32 0.03125, %v1971_v0  ;;  %v2149_v0 = vld [vmem:[%s4475_s22 + $0x78] sm:$0xff] }
0x13cd   : > { %v1982_v47 = vsub.f32 %v1962_v20, %v1979_v44  ;;  %v2144_v20 = vld [vmem:[%s4475_s22 + $0x50] sm:$0xff] }
0x13ce   : > { %v3633_v35 = vpack.c.bf16 %v2145_v16, %v2144_v20 }
0x13cf   : > { %v1985_v53 = vmul.f32 %v1982_v47, %v1982_v47 }
0x13d1   : > { %v1988_v54 = vsel %vm86_vm1, %v1985_v53, 0.0 }
0x1468   : > { %v1953_v41 = vpop.f32.mrb[16].mxu1 }
0x1469   : > { %v1954_v42 = vadd.f32 %v3082_v31, %v1953_v41  ;;  %v3382_v43 = vpop.f32.mrb[17].mxu1  ;;  %v3639_v41 = vpack.c.bf16 %v2149_v0, %v2148_v30  ;;  %v3094_v0 = vld [vmem:[%s2241_s29] ss:$0 sm:$0xff] }
0x146b   : > { %v1963_v45 = vadd.f32 %v3947_v1, %v1954_v42  ;;  %v2028_v1 = vld [vmem:[%s2027_s25] sm:$0xff] }
0x146c   : > { %v3612_v56 = vpack.c.bf16 %v2029_v55, %v2028_v1  ;;  %v3088_v1 = vld [vmem:[%s2032_s24] ss:$0 sm:$0xff] }
0x146d   : > { %v1958_v18 = vpop.f32.mrb[18].mxu1  ;;  %v1972_v46 = vsel %vm86_vm1, %v1963_v45, 0.0 }
0x146e   : > { %v1959_v50 = vadd.f32 %v3082_v31, %v1958_v18  ;;  %1973 = vadd.xlane.f32.xlu1 %v1972_v46  ;;  %v3385_v51 = vpop.f32.mrb[19].mxu1  ;;  %3613 = vmatpush3.bf16.msra.mxu0 %v3612_v56  ;;  %v2143_v31 = vld [vmem:[%s4475_s22 + $0x48] sm:$0xff] }
0x146f   : > { %3614 = vmatprep.subr.bf16.mxu0 %v3957_v3  ;;  %v3630_v34 = vpack.c.bf16 %v2143_v31, %v2142_v29 }
0x1470   : > { %v1964_v25 = vadd.f32 %v3943_v2, %v1959_v50  ;;  %v3615_v2 = vpack.c.bf16 %v2031_v58, %v2030_v57 }
0x1471   : > { %3631 = vmatpush3.bf16.msra.mxu1 %v3630_v34 }
0x1472   : > { %v1975_v52 = vsel %vm86_vm1, %v1964_v25, 0.0  ;;  %3616 = vmatpush3.bf16.msra.mxu0 %v3615_v2  ;;  %3632 = vmatprep.subr.bf16.mxu1 %v3957_v3 }
0x1473   : > { %1976 = vadd.xlane.f32.xlu0 %v1975_v52 }
0x1475   : > { %3634 = vmatpush3.bf16.msra.mxu1 %v3633_v35 }
0x1476   : > { %3635 = vmatprep.subr.bf16.mxu1 %v3957_v3 }
0x1477   : > { %1989 = vadd.xlane.f32.xlu0 %v1988_v54 }
0x1479   : > { %3637 = vmatpush3.bf16.msra.mxu1 %v3636_v32 }
0x147a   : > { %3638 = vmatprep.subr.bf16.mxu1 %v3957_v3 }
0x147d   : > { %3640 = vmatpush3.bf16.msra.mxu1 %v3639_v41 }
0x14fb   : > { %v1974_v59 = vpop.xlane.xlu1 %1973 }
0x14fc   : > { %v1980_v60 = vmul.f32 0.03125, %v1974_v59 }
0x14fe   : > { %v4441_v37 = vsub.f32 %v1963_v45, %v1980_v60 }
0x1500   : > { %v1977_v36 = vpop.xlane.xlu0 %1976  ;;  %v1986_v10 = vmul.f32 %v4441_v37, %v4441_v37 }
0x1501   : > { %v1981_v33 = vmul.f32 0.03125, %v1977_v36 }
0x1502   : > { %v1991_v9 = vsel %vm86_vm1, %v1986_v10, 0.0 }
0x1503   : > { %v4446_v49 = vsub.f32 %v1964_v25, %v1981_v33  ;;  %1992 = vadd.xlane.f32.xlu1 %v1991_v9 }
0x1504   : > { %v1990_v48 = vpop.xlane.xlu0 %1989 }
0x1505   : > { %v1997_v61 = vmul.f32 0.03125, %v1990_v48  ;;  %v1987_v62 = vmul.f32 %v4446_v49, %v4446_v49 }
0x1507   : > { %v2000_v13 = vadd.f32 1e-06, %v1997_v61  ;;  %v1994_v63 = vsel %vm86_vm1, %v1987_v62, 0.0 }
0x1508   : > { %1995 = vadd.xlane.f32.xlu0 %v1994_v63 }
0x1509   : > { %3861 = vrsqrt.f32 %v2000_v13 }
0x1513   : > { %v3862_v5 = vpop.eup %3861 }
0x1514   : > { %v2006_v7 = vmul.f32 %v3862_v5, %v1982_v47 }
0x1516   : > { %v2015_v11 = vmul.f32 %v4459_v6, %v2006_v7 }
0x1518   : > { %v4465_v12 = vadd.f32 %v4461_v8, %v2015_v11 }
0x151a   : > { %3395 = vmatmul.mubr.msk.f32.vlgmr.msra.gmra.mrb[24].mxu0 %vm86_vm1, %v4465_v12 }
0x151b   : > { %3397 = vmatprep.mubr.msk.f32.mxu0 %vm3958_vm0, %v3959_v4 }
0x1590   : > { %v1993_v42 = vpop.xlane.xlu1 %1992 }
0x1591   : > { %v1998_v43 = vmul.f32 0.03125, %v1993_v42  ;;  %v3095_v42 = vld [vmem:[%s2243_s19] ss:$0 sm:$0xff] }
0x1593   : > { %v2001_v44 = vadd.f32 1e-06, %v1998_v43 }
0x1595   : > { %3863 = vrsqrt.f32 %v2001_v44  ;;  %v1996_v45 = vpop.xlane.xlu0 %1995 }
0x1596   : > { %v1999_v18 = vmul.f32 0.03125, %v1996_v45 }
0x1598   : > { %v2002_v46 = vadd.f32 1e-06, %v1999_v18 }
0x159a   : > { %3865 = vrsqrt.f32 %v2002_v46 }
0x159f   : > { %v3864_v47 = vpop.eup %3863 }
0x15a0   : > { %v2007_v50 = vmul.f32 %v3864_v47, %v4441_v37 }
0x15a2   : > { %v2016_v51 = vmul.f32 %v4459_v6, %v2007_v50 }
0x15a4   : > { %v3866_v25 = vpop.eup %3865  ;;  %v2025_v3 = vadd.f32 %v4461_v8, %v2016_v51 }
0x15a5   : > { %v2008_v52 = vmul.f32 %v3866_v25, %v4446_v49  ;;  %v3093_v49 = vld [vmem:[%s2150_s26] ss:$0 sm:$0xff] }
0x15a6   : > { %3398 = vmatmul.mubr.msk.f32.gmra.mrb[26].mxu0 %vm86_vm1, %v2025_v3 }
0x15a7   : > { %3400 = vmatprep.mubr.msk.f32.mxu0 %vm3958_vm0, %v3959_v4  ;;  %v2017_v53 = vmul.f32 %v4459_v6, %v2008_v52 }
0x15a9   : > { %v2026_v54 = vadd.f32 %v4461_v8, %v2017_v53 }
0x15ab   : > { %3401 = vmatmul.mubr.msk.f32.gmra.mrb[28].mxu0 %vm86_vm1, %v2026_v54 }
0x15ed   : > { %v2115_v55 = vpop.f32.mrb[24].mxu0 }
0x15ee   : > { %v2116_v56 = vadd.f32 %v3088_v1, %v2115_v55  ;;  %v3396_v57 = vpop.f32.mrb[25].mxu0 }
0x15f0   : > { %v2129_v58 = vmax.f32 %v2116_v56, 0.0 }
0x15f2   : > { %3436 = vmatmul.mubr.f32.vlgmr.msra.gmra.mrb[20].mxu1 %v2129_v58  ;;  %v2302_v58 = vld [vmem:[%s4698_s13] sm:$0xff] (%p65_p0) }
0x15f3   : > { %3438 = vmatprep.mubr.msk.f32.mxu1 %vm3958_vm0, %v3959_v4 }
0x1679   : > { %v2120_v2 = vpop.f32.mrb[26].mxu0 }
0x167a   : > { %v2121_v59 = vadd.f32 %v3088_v1, %v2120_v2  ;;  %v3399_v60 = vpop.f32.mrb[27].mxu0 }
0x167b   :  { %v2304_v60 = vld [vmem:[%s4698_s13 + $0x10] sm:$0xff] (%p65_p0) }
0x167c   : > { %v2130_v37 = vmax.f32 %v2121_v59, 0.0  ;;  %v2303_v59 = vld [vmem:[%s4698_s13 + $0x8] sm:$0xff] (%p65_p0) }
0x167e   : > { %v2125_v36 = vpop.f32.mrb[28].mxu0  ;;  %3439 = vmatmul.mubr.f32.gmra.mrb[22].mxu1 %v2130_v37  ;;  %v3975_v37 = vmov (%p65_p0), 0.0|0.0  }
0x167f   : > { %v2126_v10 = vadd.f32 %v3088_v1, %v2125_v36  ;;  %v3402_v33 = vpop.f32.mrb[29].mxu0  ;;  %3441 = vmatprep.mubr.msk.f32.mxu1 %vm3958_vm0, %v3959_v4  ;;  %3641 = vmatprep.subr.bf16.mxu0 (%p65_p0), %v3975_v37  ;;  %v3642_v36 = vpack.c.bf16 (%p65_p0), %v2303_v59, %v2302_v58  ;;  %vm3976_vm0 = vmmov (%p65_p0), 0  }
0x1681   : > { %v2131_v9 = vmax.f32 %v2126_v10, 0.0  ;;  %v2305_v10 = vld [vmem:[%s4698_s13 + $0x18] sm:$0xff] (%p65_p0)  ;;  %3643 = vmatpush3.bf16.msra.mxu0 (%p65_p0), %v3642_v36 }
0x1682   :  { %3644 = vmatprep.subr.bf16.mxu0 (%p65_p0), %v3975_v37 }
0x1683   : > { %3442 = vmatmul.mubr.f32.gmra.mrb[24].mxu1 %v2131_v9 }
0x16c5   : > { %v2224_v48 = vpop.f32.mrb[20].mxu1 }
0x16c6   : > { %v2225_v61 = vadd.f32 %v3093_v49, %v2224_v48  ;;  %v3437_v62 = vpop.f32.mrb[21].mxu1 }
0x16c8   : > { %v2238_v13 = vadd.f32 %v2225_v61, %v4465_v12 }
0x16ca   : > { %v2245_v63 = vsel %vm86_vm1, %v2238_v13, 0.0 }
0x16cb   : > { %2246 = vadd.xlane.f32.xlu1 %v2245_v63 }
0x1751   : > { %v2229_v5 = vpop.f32.mrb[22].mxu1 }
0x1752   : > { %v2230_v6 = vadd.f32 %v3093_v49, %v2229_v5  ;;  %v3440_v7 = vpop.f32.mrb[23].mxu1 }
0x1753   :  { %v2396_v7 = vld [vmem:[%s4699_s14] sm:$0xff] (%p65_p0) }
0x1754   : > { %v2239_v8 = vadd.f32 %v2230_v6, %v2025_v3 }
0x1756   : > { %v2234_v4 = vpop.f32.mrb[24].mxu1  ;;  %v2248_v11 = vsel %vm86_vm1, %v2239_v8, 0.0 }
0x1757   : > { %v2235_v14 = vadd.f32 %v3093_v49, %v2234_v4  ;;  %2249 = vadd.xlane.f32.xlu0 %v2248_v11  ;;  %v3443_v15 = vpop.f32.mrb[25].mxu1 }
0x1758   : > { %v2247_v17 = vpop.xlane.xlu1 %2246  ;;  %v2399_v15 = vld [vmem:[%s4699_s14 + $0x18] sm:$0xff] (%p65_p0) }
0x1759   : > { %v2254_v40 = vmul.f32 0.03125, %v2247_v17  ;;  %v2240_v19 = vadd.f32 %v2235_v14, %v2026_v54  ;;  %v2398_v14 = vld [vmem:[%s4699_s14 + $0x10] sm:$0xff] (%p65_p0) }
0x175a   :  { %v3651_v17 = vpack.c.bf16 (%p65_p0), %v2399_v15, %v2398_v14 }
0x175b   : > { %v2257_v21 = vsub.f32 %v2238_v13, %v2254_v40  ;;  %v2251_v22 = vsel %vm86_vm1, %v2240_v19, 0.0 }
0x175c   : > { %2252 = vadd.xlane.f32.xlu1 %v2251_v22 }
0x175d   : > { %v2260_v12 = vmul.f32 %v2257_v21, %v2257_v21 }
0x175f   : > { %v2263_v23 = vsel %vm86_vm1, %v2260_v12, 0.0 }
0x1760   : > { %2264 = vadd.xlane.f32.xlu0 %v2263_v23 }
0x17e4   : > { %v2250_v24 = vpop.xlane.xlu0 %2249 }
0x17e5   : > { %v2255_v26 = vmul.f32 0.03125, %v2250_v24  ;;  %v2492_v24 = vlaneseq (%p65_p0) }
0x17e7   : > { %v2258_v27 = vsub.f32 %v2239_v8, %v2255_v26  ;;  %v2397_v8 = vld [vmem:[%s4699_s14 + $0x8] sm:$0xff] (%p65_p0) }
0x17e8   :  { %v3648_v11 = vpack.c.bf16 (%p65_p0), %v2397_v8, %v2396_v7  ;;  %v3104_v8 = vld [vmem:[%s4700_s15] ss:$0 sm:$0xff] (%p65_p0)  ;;  %s3980_s15 = smov (%p65_p0), [#allocation5]  }
0x17e9   : > { %v2253_v28 = vpop.xlane.xlu1 %2252  ;;  %v2261_v29 = vmul.f32 %v2258_v27, %v2258_v27 }
0x17ea   : > { %v2256_v31 = vmul.f32 0.03125, %v2253_v28  ;;  %v4611_v28 = vshrl.u32 (%p65_p0), %v2492_v24, 7 }
0x17eb   : > { %v2266_v34 = vsel %vm86_vm1, %v2261_v29, 0.0 }
0x17ec   : > { %v2259_v20 = vsub.f32 %v2240_v19, %v2256_v31  ;;  %2267 = vadd.xlane.f32.xlu1 %v2266_v34 }
0x17ed   : > { %v2265_v16 = vpop.xlane.xlu0 %2264 }
0x17ee   : > { %v2272_v35 = vmul.f32 0.03125, %v2265_v16  ;;  %v2262_v38 = vmul.f32 %v2259_v20, %v2259_v20 }
0x17f0   : > { %v2275_v39 = vadd.f32 1e-06, %v2272_v35  ;;  %v2269_v32 = vsel %vm86_vm1, %v2262_v38, 0.0 }
0x17f1   : > { %2270 = vadd.xlane.f32.xlu0 %v2269_v32 }
0x17f2   : > { %3867 = vrsqrt.f32 %v2275_v39 }
0x17fc   : > { %v3868_v30 = vpop.eup %3867 }
0x17fd   : > { %v2281_v41 = vmul.f32 %v3868_v30, %v2257_v21 }
0x17ff   : > { %v2290_v43 = vmul.f32 %v3094_v0, %v2281_v41 }
0x1801   : > { %v4537_v44 = vadd.f32 %v3095_v42, %v2290_v43  }
0x1879   : > { %v2268_v45 = vpop.xlane.xlu1 %2267 }
0x187a   : > { %v2273_v18 = vmul.f32 0.03125, %v2268_v45 }
0x187c   : > { %v2276_v46 = vadd.f32 1e-06, %v2273_v18 }
0x187e   : > { %3869 = vrsqrt.f32 %v2276_v46  ;;  %v2271_v47 = vpop.xlane.xlu0 %2270 }
0x187f   : > { %v2274_v50 = vmul.f32 0.03125, %v2271_v47 }
0x1881   : > { %v2277_v51 = vadd.f32 1e-06, %v2274_v50 }
0x1883   : > { %3871 = vrsqrt.f32 %v2277_v51 }
0x1888   : > { %v3870_v25 = vpop.eup %3869 }
0x1889   : > { %v2282_v3 = vmul.f32 %v3870_v25, %v2258_v27 }
0x188b   : > { %v2291_v52 = vmul.f32 %v3094_v0, %v2282_v3 }
0x188d   : > { %v3872_v53 = vpop.eup %3871  ;;  %v4539_v1 = vadd.f32 %v3095_v42, %v2291_v52  }
0x188e   : > { %v2283_v55 = vmul.f32 %v3872_v53, %v2259_v20  ;;  %67 = sbr.rel (!%p65_p0) target bundleno = 12 (0xc), region = 117 }
0x188f   : > { %v4715_v54 = vmov %v4539_v1 }
0x1890   : > { %v2292_v56 = vmul.f32 %v3094_v0, %v2283_v55  ;;  %v4717_v1 = vmov %v4715_v54  ;;  %v4718_v0 = vmov %v4537_v44 }
0x1891   :  { %v3977_v1 = vmov (%p65_p0), 0.0  }
0x1892   : > { %v2301_v57 = vadd.f32 %v3095_v42, %v2292_v56   ;;  %3452 = vmatprep.mubr.msk.f32.mxu0 (%p65_p0), %vm3976_vm0, %v3977_v1  ;;  %3461 = vmatprep.subr.mxu1 (%p65_p0), %v3977_v1 }
0x1893   :  { %3463 = vmatprep.mubr.msk.f32.mxu1 (%p65_p0), %vm3976_vm0, %v3977_v1 }
0x1894   : > { %v4716_v2 = vmov %v2301_v57 }
0x1895   :  { %v3645_v2 = vpack.c.bf16 %v2305_v10, %v2304_v60 }
0x1897   :  { %3646 = vmatpush3.bf16.msra.mxu0 %v3645_v2 }
0x1898   :  { %3653 = vmatprep.subr.bf16.mxu0 %v3975_v37 }
0x189a   :  { %3453 = vmatmul.mubr.msk.f32.vlgmr.msra.gmra.mrb[0].mxu0 %vm86_vm1, %v4537_v44 }
0x189b   :  { %3455 = vmatprep.mubr.msk.f32.mxu0 %vm3976_vm0, %v3977_v1  ;;  %3655 = vmatpush3.bf16.msra.mxu0 %v3648_v11 }
0x189c   :  { %3656 = vmatprep.subr.bf16.mxu0 %v3975_v37 }
0x189e   :  { %3456 = vmatmul.mubr.msk.f32.gmra.mrb[2].mxu0 %vm86_vm1, %v4715_v54 }
0x189f   :  { %3458 = vmatprep.mubr.msk.f32.mxu0 %vm3976_vm0, %v3977_v1  ;;  %3658 = vmatpush3.bf16.msra.mxu0 %v3651_v17 }
0x18a2   :  { %3459 = vmatmul.mubr.msk.f32.gmra.mrb[4].mxu0 %vm86_vm1, %v2301_v57 }
0x18a3   :  { %3500 = vmatprep.mubr.msk.f32.mxu0 %vm3976_vm0, %v3977_v1 }
0x196d   :  { %v2382_v33 = vpop.f32.mrb[0].mxu0 }
0x196e   :  { %v3454_v9 = vpop.f32.mrb[1].mxu0  ;;  %v2405_v48 = vrot.slane %v2382_v33, 4 }
0x1971   :  { %v4583_v49 = vpop.f32.mrb[2].mxu0 }
0x1972   :  { %v2406_v61 = vrot.slane %v4583_v49, 4  ;;  %v3457_v62 = vpop.f32.mrb[3].mxu0 }
0x1974   :  { %v2407_v13 = vsel %vm301_vm6, %v2405_v48, %v2406_v61 }
0x1975   :  { %2408 = vrot.lane.b32.xlu0 %v2407_v13, %s3978_s3  ;;  %v2392_v6 = vpop.f32.mrb[4].mxu0 }
0x1976   :  { %2691 = vrot.lane.b32.xlu1 %v2392_v6, %s3978_s3  ;;  %v3460_v4 = vpop.f32.mrb[5].mxu0 }
0x1979   :  { %2509 = vrot.lane.b32.xlu0 %v2407_v13, %s3979_s4 }
0x197a   :  { %2789 = vrot.lane.b32.xlu1 %v2392_v6, %s3979_s4 }
0x19e7   :  { %v2409_v63 = vpop.permute.xlu0 %2408 }
0x19e8   :  { %3462 = vmatpush3.xpose.msk.msra.mxu1 %vm86_vm1, %v2409_v63  ;;  %v2692_v0 = vpop.permute.xlu1 %2691 }
0x19e9   :  { %3466 = vmatprep.subr.mxu1 %v3977_v1 }
0x19eb   :  { %3464 = vmatmul.mubr.msk.f32.vlgmr.msra.gmra.mrb[0].mxu1 %vm86_vm1, %v2382_v33  ;;  %v2510_v5 = vpop.permute.xlu0 %2509 }
0x19ec   :  { %3467 = vmatpush3.msra.mxu1 %v2510_v5  ;;  %3468 = vmatprep.mubr.msk.f32.mxu1 %vm3976_vm0, %v3977_v1  ;;  %v2790_v43 = vpop.permute.xlu1 %2789 }
0x19ed   :  { %3647 = vmatprep.subr.bf16.mxu1 %v3975_v37 }
0x1abe   :  { %v2480_v40 = vpop.f32.mrb[0].mxu1 }
0x1abf   :  { %v2485_v19 = vsel %vm380_vm9, %v2480_v40, -inf  ;;  %v3465_v21 = vpop.f32.mrb[1].mxu1 }
0x1ac0   :  { %v2486_v22 = vrot.slane %v2485_v19, 4 }
0x1ac2   :  { %v2487_v12 = vmax.f32 %v2485_v19, %v2486_v22 }
0x1ac4   :  { %v2488_v23 = vrot.slane %v2487_v12, 2 }
0x1ac6   :  { %v2489_v26 = vmax.f32 %v2487_v12, %v2488_v23 }
0x1ac8   :  { %v2490_v27 = vrot.slane %v2489_v26, 1 }
0x1aca   :  { %v2491_v29 = vmax.f32 %v2489_v26, %v2490_v27 }
0x1acc   :  { %vm2494_vm3 = vcmp.eq.f32.partialorder %v2480_v40, %v2491_v29 }
0x1acd   :  { %v2495_v31 = vsel %vm2494_vm3, %v4611_v28, 4 }
0x1ace   :  { %v2496_v34 = vsel %vm380_vm9, %v2495_v31, 2147483647 }
0x1acf   :  { %v2497_v20 = vrot.slane %v2496_v34, 4 }
0x1ad1   :  { %vm2498_vm4 = vcmp.lt.s32.totalorder %v2496_v34, %v2497_v20 }
0x1ad2   :  { %v2499_v16 = vsel %vm2498_vm4, %v2496_v34, %v2497_v20 }
0x1ad3   :  { %v2500_v35 = vrot.slane %v2499_v16, 2 }
0x1ad5   :  { %vm2501_vm5 = vcmp.lt.s32.totalorder %v2499_v16, %v2500_v35 }
0x1ad6   :  { %v2502_v38 = vsel %vm2501_vm5, %v2499_v16, %v2500_v35 }
0x1ad7   :  { %v2503_v39 = vrot.slane %v2502_v38, 1 }
0x1ad9   :  { %vm2504_vm6 = vcmp.lt.s32.totalorder %v2502_v38, %v2503_v39 }
0x1ada   :  { %v2505_v32 = vsel %vm2504_vm6, %v2502_v38, %v2503_v39 }
0x1adb   :  { %vm2506_vm7 = vcmp.eq.s32.totalorder %v4611_v28, %v2505_v32 }
0x1adc   :  { %v3101_v30 = vsel %vm2506_vm7, 1.0, %v3977_v1 }
0x1add   :  { %3469 = vmatmul.mubr.msk.f32.vlgmr.msra.gmra.mrb[2].mxu1 %vm182_vm2, %v3101_v30  ;;  %2689 = vst.msk [vmem:[#allocation5] sm:$0xf] %vm380_vm9, %v3101_v30 }
0x1ade   :  { %3649 = vmatpush3.bf16.msra.mxu1 %v3648_v11  ;;  %3479 = vmatprep.mubr.msk.f32.mxu1 %vm3976_vm0, %v3977_v1  ;;  %v3105_v11 = vld [vmem:[%s4701_s16] ss:$0 sm:$0xff]  ;;  %s2976_s16 = sshll.u32 %s3980_s15, 4  ;;  %s2977_s16 = int_to_ptr.vmem [resolvable:$true] %s2976_s16 }
0x1adf   :  { %3650 = vmatprep.subr.bf16.mxu1 %v3975_v37  ;;  %s3877_s28 = scalar_lea.vmem %s2977_s16, 128  ;;  %p3882_p2 = scmp.lt.s32.totalorder %s2977_s16, %s2977_s16 }
0x1ae0   :  { %p3878_p1 = scmp.ne.s32.totalorder %s2977_s16, %s3877_s28  ;;  %p3883_p3 = scmp.lt.s32.totalorder %s3877_s28, %s3877_s28 }
0x1ae2   :  { %3652 = vmatpush3.bf16.msra.mxu1 %v3651_v17  ;;  %v2865_v17 = vrot.slane %v4715_v54, 4  ;;  %p3884_p4 = por %p3883_p3, %p3882_p2 }
0x1ae3   :  { %3482 = vmatprep.subr.mxu1 %v3977_v1 }
0x1ae4   :  { %p3885_p5 = pnand %p3884_p4, %p3878_p1 }
0x1bb0   :  { %v2582_v41 = vpop.f32.mrb[2].mxu1 }
0x1bb1   :  { %v3470_v42 = vpop.f32.mrb[3].mxu1  ;;  %3480 = vmatmul.mubr.msk.f32.vlgmr.msra.gmra.mrb[4].mxu1 %vm86_vm1, %v2582_v41 }
0x1bb2   :  { %3483 = vmatpush3.xpose.msk.msra.mxu1 %vm86_vm1, %v2692_v0  ;;  %3484 = vmatprep.mubr.msk.f32.mxu1 %vm3976_vm0, %v3977_v1 }
0x1bb3   :  { %3487 = vmatprep.subr.mxu1 %v3977_v1 }
0x1bb5   :  { %3485 = vmatmul.mubr.msk.f32.vlgmr.msra.gmra.mrb[6].mxu1 %vm86_vm1, %v2406_v61 }
0x1bb6   :  { %3488 = vmatpush3.msra.mxu1 %v2790_v43  ;;  %3489 = vmatprep.mubr.msk.f32.mxu1 %vm3976_vm0, %v3977_v1 }
0x1c84   :  { %v2655_v45 = vpop.f32.mrb[4].mxu1 }
0x1c85   :  { %v2656_v18 = vadd.f32 %v2655_v45, %v4537_v44  ;;  %v3481_v46 = vpop.f32.mrb[5].mxu1 }
0x1c87   :  { %v2660_v47 = vsel %vm2659_vm8, %v2656_v18, 0.0 }
0x1c88   :  { %2661 = vadd.xlane.f32.xlu0 %v2660_v47  ;;  %v2763_v50 = vpop.f32.mrb[6].mxu1 }
0x1c89   :  { %v2767_v51 = vsel %vm380_vm9, %v2763_v50, -inf  ;;  %v3486_v25 = vpop.f32.mrb[7].mxu1 }
0x1c8a   :  { %v2768_v3 = vrot.slane %v2767_v51, 4 }
0x1c8c   :  { %v2769_v52 = vmax.f32 %v2767_v51, %v2768_v3 }
0x1c8e   :  { %v2770_v53 = vrot.slane %v2769_v52, 2 }
0x1c90   :  { %v2771_v55 = vmax.f32 %v2769_v52, %v2770_v53 }
0x1c92   :  { %v2772_v56 = vrot.slane %v2771_v55, 1 }
0x1c94   :  { %v2773_v57 = vmax.f32 %v2771_v55, %v2772_v56 }
0x1c96   :  { %vm2774_vm10 = vcmp.eq.f32.partialorder %v2763_v50, %v2773_v57 }
0x1c97   :  { %v2775_v58 = vsel %vm2774_vm10, %v4611_v28, 4 }
0x1c98   :  { %v2776_v59 = vsel %vm380_vm9, %v2775_v58, 2147483647 }
0x1c99   :  { %v2777_v44 = vrot.slane %v2776_v59, 4 }
0x1c9b   :  { %vm2778_vm11 = vcmp.lt.s32.totalorder %v2776_v59, %v2777_v44 }
0x1c9c   :  { %v2779_v60 = vsel %vm2778_vm11, %v2776_v59, %v2777_v44 }
0x1c9d   :  { %v2780_v37 = vrot.slane %v2779_v60, 2 }
0x1c9f   :  { %vm2781_vm12 = vcmp.lt.s32.totalorder %v2779_v60, %v2780_v37 }
0x1ca0   :  { %v2782_v36 = vsel %vm2781_vm12, %v2779_v60, %v2780_v37 }
0x1ca1   :  { %v2783_v10 = vrot.slane %v2782_v36, 1 }
0x1ca3   :  { %vm2784_vm13 = vcmp.lt.s32.totalorder %v2782_v36, %v2783_v10 }
0x1ca4   :  { %v2785_v2 = vsel %vm2784_vm13, %v2782_v36, %v2783_v10 }
0x1ca5   :  { %vm2786_vm14 = vcmp.eq.s32.totalorder %v4611_v28, %v2785_v2 }
0x1ca6   :  { %v3108_v33 = vsel %vm2786_vm14, 1.0, %v3977_v1 }
0x1ca7   :  { %3490 = vmatmul.mubr.msk.f32.vlgmr.msra.gmra.mrb[8].mxu1 %vm182_vm2, %v3108_v33  ;;  %2958 = vst.msk [vmem:[#allocation5 + $0x4] sm:$0xf] %vm380_vm9, %v3108_v33 }
0x1d15   :  { %v2662_v9 = vpop.xlane.xlu0 %2661 }
0x1d16   :  { %v2664_v49 = vmul.f32 0.03125, %v2662_v9 }
0x1d18   :  { %v2665_v48 = vsub.f32 %v2656_v18, %v2664_v49 }
0x1d1a   :  { %v2666_v61 = vmul.f32 %v2665_v48, %v2665_v48 }
0x1d1c   :  { %v2667_v62 = vsel %vm2659_vm8, %v2666_v61, 0.0 }
0x1d1d   :  { %2668 = vadd.xlane.f32.xlu0 %v2667_v62 }
0x1d7a   :  { %v2861_v13 = vpop.f32.mrb[8].mxu1 }
0x1d7b   :  { %v3491_v63 = vpop.f32.mrb[9].mxu1  ;;  %3501 = vmatmul.mubr.msk.f32.vlgmr.msra.gmra.mrb[6].mxu0 %vm86_vm1, %v2861_v13 }
0x1daa   :  { %v2669_v5 = vpop.xlane.xlu0 %2668 }
0x1dab   :  { %v2670_v6 = vmul.f32 0.03125, %v2669_v5 }
0x1dad   :  { %v2671_v7 = vadd.f32 1e-06, %v2670_v6 }
0x1daf   :  { %3873 = vrsqrt.f32 %v2671_v7 }
0x1db9   :  { %v3874_v1 = vpop.eup %3873 }
0x1dba   :  { %v2673_v4 = vmul.f32 %v3874_v1, %v2665_v48 }
0x1dbc   :  { %v2680_v14 = vmul.f32 %v3104_v8, %v2673_v4 }
0x1dbe   :  { %v2687_v15 = vadd.f32 %v3105_v11, %v2680_v14 }
0x1dc0   :  { %2688 = vst.msk [vmem:[#allocation3] sm:$0xf] %vm2659_vm8, %v2687_v15 }
0x1e4e   :  { %v2936_v40 = vpop.f32.mrb[6].mxu0 }
0x1e4f   :  { %v2937_v19 = vadd.f32 %v2936_v40, %v2865_v17  ;;  %v3502_v21 = vpop.f32.mrb[7].mxu0 }
0x1e51   :  { %v2940_v22 = vsel %vm2659_vm8, %v2937_v19, 0.0 }
0x1e52   :  { %2941 = vadd.xlane.f32.xlu1 %v2940_v22 }
0x1edf   :  { %v2942_v12 = vpop.xlane.xlu1 %2941 }
0x1ee0   :  { %v2943_v23 = vmul.f32 0.03125, %v2942_v12 }
0x1ee2   :  { %v2944_v24 = vsub.f32 %v2937_v19, %v2943_v23 }
0x1ee4   :  { %v2945_v26 = vmul.f32 %v2944_v24, %v2944_v24 }
0x1ee6   :  { %v2946_v27 = vsel %vm2659_vm8, %v2945_v26, 0.0 }
0x1ee7   :  { %2947 = vadd.xlane.f32.xlu0 %v2946_v27 }
0x1ee8   :  { %3888 = shalt.err (!%p3885_p5)
}
0x1ee9   :  { %s3889_s0 = scalar_lea.hbm %s4703_s18, 128 }
0x1eea   :  { %p3890_p6 = scmp.ne.s32.totalorder %s4703_s18, %s3889_s0  ;;  %p3893_p7 = scmp.lt.u32.totalorder %s3889_s0, %s4703_s18 }
0x1eec   :  { %p3895_p8 = pnand %p3893_p7, %p3890_p6 }
0x1eee   :  { %3898 = shalt.err (!%p3895_p8)
}
0x1eef   :  { %s3981_s23 = smov 4   ;;  %s3982_s21 = smov [#allocation3]  }
0x1ef0   :  { %2982 = dma.vmem_to_hbm [thread:$0]  %s2977_s16, 128, %s4703_s18, [#allocation6], %s3979_s4, %s3979_s4, %s3981_s23  }
0x1ef1   :  { %s2964_s26 = sshll.u32 %s3982_s21, 4  ;;  %s2965_s26 = int_to_ptr.vmem [resolvable:$true] %s2964_s26 }
0x1ef2   :  { %s3899_s3 = scalar_lea.vmem %s2965_s26, 128  ;;  %p3904_p10 = scmp.lt.s32.totalorder %s2965_s26, %s2965_s26 }
0x1ef3   :  { %p3900_p9 = scmp.ne.s32.totalorder %s2965_s26, %s3899_s3  ;;  %p3905_p11 = scmp.lt.s32.totalorder %s3899_s3, %s3899_s3 }
0x1ef5   :  { %p3906_p12 = por %p3905_p11, %p3904_p10 }
0x1ef7   :  { %p3907_p13 = pnand %p3906_p12, %p3900_p9 }
0x1f74   :  { %v2948_v54 = vpop.xlane.xlu0 %2947 }
0x1f75   :  { %v2949_v28 = vmul.f32 0.03125, %v2948_v54 }
0x1f77   :  { %v2950_v29 = vadd.f32 1e-06, %v2949_v28 }
0x1f79   :  { %3875 = vrsqrt.f32 %v2950_v29 }
0x1f83   :  { %v3876_v31 = vpop.eup %3875 }
0x1f84   :  { %v2952_v34 = vmul.f32 %v3876_v31, %v2944_v24 }
0x1f86   :  { %v2953_v20 = vmul.f32 %v3104_v8, %v2952_v34 }
0x1f88   :  { %v2954_v16 = vadd.f32 %v3105_v11, %v2953_v20 }
0x1f8a   :  { %2956 = vst.msk [vmem:[#allocation3 + $0x4] sm:$0xf] %vm2659_vm8, %v2954_v16 }
0x1f8b   :  { %3910 = shalt.err (!%p3907_p13)
}
0x1f8c   :  { %s3911_s6 = scalar_lea.hbm %s4702_s17, 128 }
0x1f8d   :  { %p3912_p0 = scmp.ne.s32.totalorder %s4702_s17, %s3911_s6  ;;  %p3915_p1 = scmp.lt.u32.totalorder %s3911_s6, %s4702_s17 }
0x1f8f   :  { %p3917_p2 = pnand %p3915_p1, %p3912_p0 }
0x1f91   :  { %3920 = shalt.err (!%p3917_p2)
}
0x1f92   :  { %2970 = dma.vmem_to_hbm [thread:$0]  %s2965_s26, 128, %s4702_s17, [#allocation4], %s3979_s4, %s3979_s4, %s3981_s23  }
0x1f93   :  { %3937 = dma.done.wait [#allocation4], 128  }
0x1f94   :  { %3938 = vsyncadd [#allocation4], 4294967168 }
0x1f95   :  { %3939 = dma.done.wait [#allocation6], 128  }
0x1f96   :  { %3940 = vsyncadd [#allocation6], 4294967168 }
0x1f97   :  { %2989 = vsyncpa [#allocation4], 1 }
0x1f98   :  { %2990 = vsyncpa [#allocation6], 1 }

</bundles_post_ra>
